<compile_context>
chip_gen: v6e
topology: v6e:2x2x1
jax: 0.10.0
libtpu: 0.0.40
codegen_flags: <defaults>
</compile_context>

<pallas_src>
import jax
import jax.numpy as jnp
import numpy as np
from jax.experimental import pallas as pl
from jax.experimental.pallas import tpu as pltpu

# ----------------------------------------------------------------------------
# Synthetic `parameters` dict (the PyTorch file refers to a module-level
# global `parameters`; we define a deterministic stand-in here).
# ----------------------------------------------------------------------------
PARAMETERS = {
    "optimizer.lr": [0.1, 0.01, 0.001, 0.0001],
    "optimizer.momentum": [0.8, 0.9, 0.95],
    "train.batch_size": [32, 64, 128, 256, 512],
}

LANE = 128


def _round_up(x, m):
    return ((x + m - 1) // m) * m


# ----------------------------------------------------------------------------
# Pallas kernel: L fused GRU-cell steps (seq_len == 1) + head linear + softmax
# ----------------------------------------------------------------------------
def _make_controller_kernel(num_layers: int, D: int):
    def kernel(x_idx_ref, head_info_ref,       # scalar prefetch (SMEM)
               emb_ref, h_ref, w_ref, b_ref, hw_ref, hb_ref,   # inputs (VMEM)
               probs_ref, hout_ref):                            # outputs (VMEM)
        del x_idx_ref  # only used by the embedding BlockSpec index_map

        x = emb_ref[0]                                  # [1, D]  gathered row
        for l in range(num_layers):
            h_prev = h_ref[l:l + 1, :]                  # [1, D]
            inp = jnp.concatenate([x, h_prev], axis=1)  # [1, 2D]
            # One fused MXU matmul per layer: [1,2D] @ [2D,6D]  (+ biases)
            g = jnp.dot(inp, w_ref[l],
                        preferred_element_type=jnp.float32) + b_ref[l]  # [1,6D]
            i_r, h_r = g[:, 0 * D:1 * D], g[:, 1 * D:2 * D]
            i_z, h_z = g[:, 2 * D:3 * D], g[:, 3 * D:4 * D]
            i_n, h_n = g[:, 4 * D:5 * D], g[:, 5 * D:6 * D]

            r = jax.nn.sigmoid(i_r + h_r)
            z = jax.nn.sigmoid(i_z + h_z)
            n = jnp.tanh(i_n + r * h_n)
            h_new = (1.0 - z) * n + z * h_prev          # [1, D] (pad lanes stay 0)

            hout_ref[l:l + 1, :] = h_new
            x = h_new

        # All heads fused: logits over every head's columns, then mask+softmax
        # over the active head's [off, off+len) lane range.
        logits = jnp.dot(x, hw_ref[...],
                         preferred_element_type=jnp.float32) + hb_ref[...]  # [1, VP]
        off = head_info_ref[0]
        length = head_info_ref[1]
        lane = jax.lax.broadcasted_iota(jnp.int32, logits.shape, 1)
        valid = (lane >= off) & (lane < off + length)
        masked = jnp.where(valid, logits, jnp.full_like(logits, -1e30))
        m = jnp.max(masked, axis=-1, keepdims=True)
        e = jnp.where(valid, jnp.exp(masked - m), 0.0)
        denom = jnp.sum(e, axis=-1, keepdims=True)
        probs_ref[...] = e * pl.reciprocal(denom, approx=False)

    return kernel


def _build_forward_fn(num_layers: int, D: int, VP: int):
    kernel = _make_controller_kernel(num_layers, D)
    grid_spec = pltpu.PrefetchScalarGridSpec(
        num_scalar_prefetch=2,            # (x_idx, head_info) -> SMEM
        grid=(1,),
        in_specs=[
            # Embedding row gather driven by the scalar-prefetched token index.
            pl.BlockSpec((1, 1, D), lambda i, xs, hi: (xs[0], 0, 0)),
            pl.BlockSpec((num_layers, D), lambda i, xs, hi: (0, 0)),          # h_in
            pl.BlockSpec((num_layers, 2 * D, 6 * D), lambda i, xs, hi: (0, 0, 0)),  # W_all
            pl.BlockSpec((num_layers, 1, 6 * D), lambda i, xs, hi: (0, 0, 0)),      # b_all
            pl.BlockSpec((D, VP), lambda i, xs, hi: (0, 0)),                  # head_w
            pl.BlockSpec((1, VP), lambda i, xs, hi: (0, 0)),                  # head_b
        ],
        out_specs=(
            pl.BlockSpec((1, VP), lambda i, xs, hi: (0, 0)),                  # probs
            pl.BlockSpec((num_layers, D), lambda i, xs, hi: (0, 0)),          # h_out
        ),
    )
    fwd = pl.pallas_call(
        kernel,
        out_shape=(
            jax.ShapeDtypeStruct((1, VP), jnp.float32),
            jax.ShapeDtypeStruct((num_layers, D), jnp.float32),
        ),
        grid_spec=grid_spec,
        compiler_params=pltpu.CompilerParams(dimension_semantics=("arbitrary",)),
    )
    # One jitted, shape-stable executable shared by every head / every call.
    return jax.jit(fwd)


# ----------------------------------------------------------------------------
# One-time weight packing (pre-transposed, padded, stacked)
# ----------------------------------------------------------------------------
def pack_params(params, hidden_size, num_layers, embedding_size):
    H, L, E = hidden_size, num_layers, embedding_size
    D = _round_up(max(H, E), LANE)      # 128 : padded hidden / input lane width
    G = 6 * D                           # interleaved gate columns i_r,h_r,i_z,h_z,i_n,h_n

    len_action = params["embedding"].shape[0]
    emb = np.zeros((len_action, 1, D), np.float32)
    emb[:, 0, :E] = np.asarray(params["embedding"], np.float32)

    W_all = np.zeros((L, 2 * D, G), np.float32)   # rows 0:D -> input, D:2D -> h_prev
    b_all = np.zeros((L, 1, G), np.float32)
    for l in range(L):
        w_ih, w_hh, b_ih, b_hh = (np.asarray(a, np.float32) for a in params["gru"][l])
        in_sz = w_ih.shape[1]
        w_ih_t, w_hh_t = w_ih.T, w_hh.T            # [in, 3H], [H, 3H]
        for g in range(3):                          # torch gate order r, z, n
            ci = (2 * g) * D                        # i_<gate> column block
            ch = (2 * g + 1) * D                    # h_<gate> column block
            W_all[l, :in_sz, ci:ci + H] = w_ih_t[:, g * H:(g + 1) * H]
            W_all[l, D:D + H, ch:ch + H] = w_hh_t[:, g * H:(g + 1) * H]
            b_all[l, 0, ci:ci + H] = b_ih[g * H:(g + 1) * H]
            b_all[l, 0, ch:ch + H] = b_hh[g * H:(g + 1) * H]

    v_tot = sum(len(v) for v in PARAMETERS.values())
    VP = _round_up(v_tot, LANE)
    head_w = np.zeros((D, VP), np.float32)
    head_b = np.zeros((1, VP), np.float32)
    head_slices, head_info = {}, {}
    off = 0
    for parameter, values in PARAMETERS.items():
        name = parameter.replace(".", "_")
        hw, hb = params["heads"][name]              # [V, H], [V]
        V = len(values)
        head_w[:H, off:off + V] = np.asarray(hw, np.float32).T
        head_b[0, off:off + V] = np.asarray(hb, np.float32)
        head_slices[parameter] = (off, V)
        head_info[parameter] = jnp.array([off, V], jnp.int32)
        off += V

    return {
        "L": L, "H": H, "E": E, "D": D, "VP": VP,
        "emb": jnp.asarray(emb),
        "W_all": jnp.asarray(W_all),
        "b_all": jnp.asarray(b_all),
        "head_w": jnp.asarray(head_w),
        "head_b": jnp.asarray(head_b),
        "head_slices": head_slices,
        "head_info": head_info,
        "fwd": _build_forward_fn(L, D, VP),
    }


# ----------------------------------------------------------------------------
# Wrapper: Pallas equivalent of ControllerNet.forward(x, h_in, parameter)
# ----------------------------------------------------------------------------
def controller_forward(params, x_idx, h_in, parameter):
    """x_idx: int32 [1]; h_in: f32 [L, 1, H] -> (probs [1, V], h_out [L, 1, H])."""
    pk = params["packed"]
    L, H, D = pk["L"], pk["H"], pk["D"]
    off, V = pk["head_slices"][parameter]

    x_idx = jnp.asarray(x_idx, jnp.int32).reshape(1)
    h_pad = jnp.pad(h_in.reshape(L, H).astype(jnp.float32), ((0, 0), (0, D - H)))

    probs_pad, hout_pad = pk["fwd"](
        x_idx, pk["head_info"][parameter],
        pk["emb"], h_pad, pk["W_all"], pk["b_all"], pk["head_w"], pk["head_b"])

    probs = probs_pad[:, off:off + V]
    h_out = hout_pad[:, :H].reshape(L, 1, H)
    return probs, h_out


# ----------------------------------------------------------------------------
# Deterministic parameter initialization (shapes follow the PyTorch __init__)
# ----------------------------------------------------------------------------
def init_params(key, hidden_size, num_layers, embedding_size):
    len_action = sum(map(len, PARAMETERS.values()))
    keys = jax.random.split(key, 2 + 4 * num_layers + 2 * len(PARAMETERS))
    k = iter(keys)

    def u(kk, shape, scale=0.1):
        return jax.random.uniform(kk, shape, jnp.float32, -scale, scale)

    params = {}
    params["embedding"] = u(next(k), (len_action, embedding_size))

    gru = []
    for l in range(num_layers):
        in_sz = embedding_size if l == 0 else hidden_size
        w_ih = u(next(k), (3 * hidden_size, in_sz))
        w_hh = u(next(k), (3 * hidden_size, hidden_size))
        b_ih = u(next(k), (3 * hidden_size,))
        b_hh = u(next(k), (3 * hidden_size,))
        gru.append((w_ih, w_hh, b_ih, b_hh))
    params["gru"] = gru

    heads = {}
    for parameter, values in PARAMETERS.items():
        head_name = parameter.replace(".", "_")
        hw = u(next(k), (len(values), hidden_size))
        hb = u(next(k), (len(values),))
        heads[head_name] = (hw, hb)
    params["heads"] = heads

    start_index, cur = {}, 0
    for p in PARAMETERS:
        start_index[p] = cur
        cur += len(PARAMETERS[p])
    params["start_index"] = start_index

    # One-time packing (pre-transposed / padded / stacked) + jitted pallas fn.
    params["packed"] = pack_params(params, hidden_size, num_layers, embedding_size)
    return params


# ----------------------------------------------------------------------------
# Pure-JAX reference (for correctness check of the kernel math)
# ----------------------------------------------------------------------------
def reference_forward(params, x_idx, h_in, parameter):
    emb = params["embedding"][x_idx]              # [1, E]
    L, _, H = h_in.shape
    inp = emb
    h_out = []
    for l in range(L):
        w_ih, w_hh, b_ih, b_hh = params["gru"][l]
        h_prev = h_in[l]                          # [1, H]
        gi = inp @ w_ih.T + b_ih
        gh = h_prev @ w_hh.T + b_hh
        i_r, i_z, i_n = jnp.split(gi, 3, axis=-1)
        h_r, h_z, h_n = jnp.split(gh, 3, axis=-1)
        r = jax.nn.sigmoid(i_r + h_r)
        z = jax.nn.sigmoid(i_z + h_z)
        n = jnp.tanh(i_n + r * h_n)
        h_new = (1.0 - z) * n + z * h_prev
        h_out.append(h_new)
        inp = h_new
    head_name = parameter.replace(".", "_")
    hw, hb = params["heads"][head_name]
    logits = inp @ hw.T + hb
    probs = jax.nn.softmax(logits, axis=-1)
    return probs, jnp.stack(h_out, axis=0)


if __name__ == "__main__":
    hidden_size, num_layers, embedding_size = 32, 2, 16

    key = jax.random.PRNGKey(0)
    pkey, hkey = jax.random.split(key)
    params = init_params(pkey, hidden_size, num_layers, embedding_size)

    last_param = [*PARAMETERS.keys()][-1]
    dummy_index = params["start_index"][last_param]
    x_idx = jnp.array([dummy_index], dtype=jnp.int32)           # LongTensor([dummy_index])
    h_in = jax.random.normal(hkey, (num_layers, 1, hidden_size), jnp.float32)

    # Every head reuses the SAME compiled pallas executable (head selected via
    # a scalar-prefetched offset), so this loop triggers exactly one compile.
    for parameter in PARAMETERS:
        probs, h_out = controller_forward(params, x_idx, h_in, parameter)
        probs = jax.block_until_ready(probs)
        h_out = jax.block_until_ready(h_out)

        ref_probs, ref_h = reference_forward(params, x_idx, h_in, parameter)
        assert probs.shape == (1, len(PARAMETERS[parameter]))
        assert h_out.shape == (num_layers, 1, hidden_size)
        assert jnp.allclose(probs, ref_probs, atol=1e-4), f"probs mismatch ({parameter})"
        assert jnp.allclose(h_out, ref_h, atol=1e-4), f"h_out mismatch ({parameter})"
        assert jnp.allclose(jnp.sum(probs), 1.0, atol=1e-5)

    # TODO(synk): Categorical sampling / log_prob (the sample()/evaluate() host
    # loops) stay outside the kernel; for long autoregressive rollouts those
    # loops could be folded into one pallas_call with grid=(T,) (weights
    # resident in VMEM, h carried in scratch) to amortize launch + weight DMA.
    print("KERNEL_OK")
</pallas_src>

<mosaic_0001>
module attributes {stable_mosaic.version = 11 : i64} {
  func.func @kernel(%arg0: i32, %arg1: memref<1xi32, #tpu.memory_space<smem>>, %arg2: memref<2xi32, #tpu.memory_space<smem>>, %arg3: memref<1x1x128xf32, #tpu.memory_space<vmem>>, %arg4: memref<2x128xf32, #tpu.memory_space<vmem>>, %arg5: memref<2x256x768xf32, #tpu.memory_space<vmem>>, %arg6: memref<2x1x768xf32, #tpu.memory_space<vmem>>, %arg7: memref<128x128xf32, #tpu.memory_space<vmem>>, %arg8: memref<1x128xf32, #tpu.memory_space<vmem>>, %arg9: memref<1x128xf32, #tpu.memory_space<vmem>>, %arg10: memref<2x128xf32, #tpu.memory_space<vmem>>) attributes {dimension_semantics = [#tpu.dimension_semantics<arbitrary>], iteration_bounds = array<i64: 1>, scalar_prefetch = 2 : i64, scratch_operands = 0 : i64, tpu.core_type = #tpu.core_type<tc>, window_params = [{transform_indices = @transform_0, window_bounds = array<i64: 1, 1, 128>}, {pipeline_mode = #tpu.pipeline_mode<synchronous>, transform_indices = @transform_1, window_bounds = array<i64: 2, 128>}, {pipeline_mode = #tpu.pipeline_mode<synchronous>, transform_indices = @transform_2, window_bounds = array<i64: 2, 256, 768>}, {pipeline_mode = #tpu.pipeline_mode<synchronous>, transform_indices = @transform_3, window_bounds = array<i64: 2, 1, 768>}, {pipeline_mode = #tpu.pipeline_mode<synchronous>, transform_indices = @transform_4, window_bounds = array<i64: 128, 128>}, {pipeline_mode = #tpu.pipeline_mode<synchronous>, transform_indices = @transform_5, window_bounds = array<i64: 1, 128>}, {pipeline_mode = #tpu.pipeline_mode<synchronous>, transform_indices = @transform_6, window_bounds = array<i64: 1, 128>}, {pipeline_mode = #tpu.pipeline_mode<synchronous>, transform_indices = @transform_7, window_bounds = array<i64: 2, 128>}]} {
    %c0 = arith.constant 0 : index
    %c0_0 = arith.constant 0 : index
    %c0_1 = arith.constant 0 : index
    %0 = vector.load %arg3[%c0, %c0_0, %c0_1] : memref<1x1x128xf32, #tpu.memory_space<vmem>>, vector<1x1x128xf32>
    %1 = vector.shape_cast %0 : vector<1x1x128xf32> to vector<1x128xf32>
    %c0_2 = arith.constant 0 : index
    %c0_3 = arith.constant 0 : index
    %2 = vector.load %arg4[%c0_2, %c0_3] : memref<2x128xf32, #tpu.memory_space<vmem>>, vector<1x128xf32>
    %3 = tpu.concatenate %1, %2 in 1 : vector<1x128xf32>, vector<1x128xf32> -> vector<1x256xf32>
    %c0_4 = arith.constant 0 : index
    %c0_5 = arith.constant 0 : index
    %c0_6 = arith.constant 0 : index
    %4 = vector.load %arg5[%c0_4, %c0_5, %c0_6] : memref<2x256x768xf32, #tpu.memory_space<vmem>>, vector<1x256x768xf32>
    %5 = vector.shape_cast %4 : vector<1x256x768xf32> to vector<256x768xf32>
    %cst = arith.constant dense<0.000000e+00> : vector<1x768xf32>
    %6 = tpu.matmul %3, %5, %cst {dimension_numbers = #tpu.dot_dimension_numbers<[1], [0], [0], [1], [0, 0, 1, 1], [], []>} : vector<1x256xf32>, vector<256x768xf32>, vector<1x768xf32> -> vector<1x768xf32>
    %c0_7 = arith.constant 0 : index
    %c0_8 = arith.constant 0 : index
    %c0_9 = arith.constant 0 : index
    %7 = vector.load %arg6[%c0_7, %c0_8, %c0_9] : memref<2x1x768xf32, #tpu.memory_space<vmem>>, vector<1x1x768xf32>
    %8 = vector.shape_cast %7 : vector<1x1x768xf32> to vector<1x768xf32>
    %9 = arith.addf %6, %8 : vector<1x768xf32>
    %10 = vector.extract_strided_slice %9 {offsets = [0, 0], sizes = [1, 128], strides = [1, 1]} : vector<1x768xf32> to vector<1x128xf32>
    %11 = vector.extract_strided_slice %9 {offsets = [0, 128], sizes = [1, 128], strides = [1, 1]} : vector<1x768xf32> to vector<1x128xf32>
    %12 = vector.extract_strided_slice %9 {offsets = [0, 256], sizes = [1, 128], strides = [1, 1]} : vector<1x768xf32> to vector<1x128xf32>
    %13 = vector.extract_strided_slice %9 {offsets = [0, 384], sizes = [1, 128], strides = [1, 1]} : vector<1x768xf32> to vector<1x128xf32>
    %14 = vector.extract_strided_slice %9 {offsets = [0, 512], sizes = [1, 128], strides = [1, 1]} : vector<1x768xf32> to vector<1x128xf32>
    %15 = vector.extract_strided_slice %9 {offsets = [0, 640], sizes = [1, 128], strides = [1, 1]} : vector<1x768xf32> to vector<1x128xf32>
    %16 = arith.addf %10, %11 : vector<1x128xf32>
    %17 = arith.negf %16 : vector<1x128xf32>
    %18 = math.exp %17 : vector<1x128xf32>
    %cst_10 = arith.constant 1.000000e+00 : f32
    %19 = vector.broadcast %cst_10 : f32 to vector<1x128xf32>
    %20 = arith.addf %19, %18 : vector<1x128xf32>
    %21 = arith.divf %19, %20 : vector<1x128xf32>
    %22 = arith.addf %12, %13 : vector<1x128xf32>
    %23 = arith.negf %22 : vector<1x128xf32>
    %24 = math.exp %23 : vector<1x128xf32>
    %cst_11 = arith.constant 1.000000e+00 : f32
    %25 = vector.broadcast %cst_11 : f32 to vector<1x128xf32>
    %26 = arith.addf %25, %24 : vector<1x128xf32>
    %27 = arith.divf %25, %26 : vector<1x128xf32>
    %28 = arith.mulf %21, %15 : vector<1x128xf32>
    %29 = arith.addf %14, %28 : vector<1x128xf32>
    %30 = math.tanh %29 : vector<1x128xf32>
    %cst_12 = arith.constant 1.000000e+00 : f32
    %31 = vector.broadcast %cst_12 : f32 to vector<1x128xf32>
    %32 = arith.subf %31, %27 : vector<1x128xf32>
    %33 = arith.mulf %32, %30 : vector<1x128xf32>
    %34 = arith.mulf %27, %2 : vector<1x128xf32>
    %35 = arith.addf %33, %34 : vector<1x128xf32>
    %c0_13 = arith.constant 0 : index
    %c0_14 = arith.constant 0 : index
    %36 = vector.load %arg10[%c0_13, %c0_14] : memref<2x128xf32, #tpu.memory_space<vmem>>, vector<1x128xf32>
    tpu.vector_store %arg10[%c0_13, %c0_14], %35 {strides = array<i32>} : memref<2x128xf32, #tpu.memory_space<vmem>>, vector<1x128xf32>,
    %c1 = arith.constant 1 : index
    %c0_15 = arith.constant 0 : index
    %37 = vector.load %arg4[%c1, %c0_15] : memref<2x128xf32, #tpu.memory_space<vmem>>, vector<1x128xf32>
    %38 = tpu.concatenate %35, %37 in 1 : vector<1x128xf32>, vector<1x128xf32> -> vector<1x256xf32>
    %c1_16 = arith.constant 1 : index
    %c0_17 = arith.constant 0 : index
    %c0_18 = arith.constant 0 : index
    %39 = vector.load %arg5[%c1_16, %c0_17, %c0_18] : memref<2x256x768xf32, #tpu.memory_space<vmem>>, vector<1x256x768xf32>
    %40 = vector.shape_cast %39 : vector<1x256x768xf32> to vector<256x768xf32>
    %cst_19 = arith.constant dense<0.000000e+00> : vector<1x768xf32>
    %41 = tpu.matmul %38, %40, %cst_19 {dimension_numbers = #tpu.dot_dimension_numbers<[1], [0], [0], [1], [0, 0, 1, 1], [], []>} : vector<1x256xf32>, vector<256x768xf32>, vector<1x768xf32> -> vector<1x768xf32>
    %c1_20 = arith.constant 1 : index
    %c0_21 = arith.constant 0 : index
    %c0_22 = arith.constant 0 : index
    %42 = vector.load %arg6[%c1_20, %c0_21, %c0_22] : memref<2x1x768xf32, #tpu.memory_space<vmem>>, vector<1x1x768xf32>
    %43 = vector.shape_cast %42 : vector<1x1x768xf32> to vector<1x768xf32>
    %44 = arith.addf %41, %43 : vector<1x768xf32>
    %45 = vector.extract_strided_slice %44 {offsets = [0, 0], sizes = [1, 128], strides = [1, 1]} : vector<1x768xf32> to vector<1x128xf32>
    %46 = vector.extract_strided_slice %44 {offsets = [0, 128], sizes = [1, 128], strides = [1, 1]} : vector<1x768xf32> to vector<1x128xf32>
    %47 = vector.extract_strided_slice %44 {offsets = [0, 256], sizes = [1, 128], strides = [1, 1]} : vector<1x768xf32> to vector<1x128xf32>
    %48 = vector.extract_strided_slice %44 {offsets = [0, 384], sizes = [1, 128], strides = [1, 1]} : vector<1x768xf32> to vector<1x128xf32>
    %49 = vector.extract_strided_slice %44 {offsets = [0, 512], sizes = [1, 128], strides = [1, 1]} : vector<1x768xf32> to vector<1x128xf32>
    %50 = vector.extract_strided_slice %44 {offsets = [0, 640], sizes = [1, 128], strides = [1, 1]} : vector<1x768xf32> to vector<1x128xf32>
    %51 = arith.addf %45, %46 : vector<1x128xf32>
    %52 = arith.negf %51 : vector<1x128xf32>
    %53 = math.exp %52 : vector<1x128xf32>
    %cst_23 = arith.constant 1.000000e+00 : f32
    %54 = vector.broadcast %cst_23 : f32 to vector<1x128xf32>
    %55 = arith.addf %54, %53 : vector<1x128xf32>
    %56 = arith.divf %54, %55 : vector<1x128xf32>
    %57 = arith.addf %47, %48 : vector<1x128xf32>
    %58 = arith.negf %57 : vector<1x128xf32>
    %59 = math.exp %58 : vector<1x128xf32>
    %cst_24 = arith.constant 1.000000e+00 : f32
    %60 = vector.broadcast %cst_24 : f32 to vector<1x128xf32>
    %61 = arith.addf %60, %59 : vector<1x128xf32>
    %62 = arith.divf %60, %61 : vector<1x128xf32>
    %63 = arith.mulf %56, %50 : vector<1x128xf32>
    %64 = arith.addf %49, %63 : vector<1x128xf32>
    %65 = math.tanh %64 : vector<1x128xf32>
    %cst_25 = arith.constant 1.000000e+00 : f32
    %66 = vector.broadcast %cst_25 : f32 to vector<1x128xf32>
    %67 = arith.subf %66, %62 : vector<1x128xf32>
    %68 = arith.mulf %67, %65 : vector<1x128xf32>
    %69 = arith.mulf %62, %37 : vector<1x128xf32>
    %70 = arith.addf %68, %69 : vector<1x128xf32>
    %c1_26 = arith.constant 1 : index
    %c0_27 = arith.constant 0 : index
    %71 = vector.load %arg10[%c1_26, %c0_27] : memref<2x128xf32, #tpu.memory_space<vmem>>, vector<1x128xf32>
    tpu.vector_store %arg10[%c1_26, %c0_27], %70 {strides = array<i32>} : memref<2x128xf32, #tpu.memory_space<vmem>>, vector<1x128xf32>,
    %c0_28 = arith.constant 0 : index
    %c0_29 = arith.constant 0 : index
    %72 = vector.load %arg7[%c0_28, %c0_29] : memref<128x128xf32, #tpu.memory_space<vmem>>, vector<128x128xf32>
    %cst_30 = arith.constant dense<0.000000e+00> : vector<1x128xf32>
    %73 = tpu.matmul %70, %72, %cst_30 {dimension_numbers = #tpu.dot_dimension_numbers<[1], [0], [0], [1], [0, 0, 1, 1], [], []>} : vector<1x128xf32>, vector<128x128xf32>, vector<1x128xf32> -> vector<1x128xf32>
    %c0_31 = arith.constant 0 : index
    %c0_32 = arith.constant 0 : index
    %74 = vector.load %arg8[%c0_31, %c0_32] : memref<1x128xf32, #tpu.memory_space<vmem>>, vector<1x128xf32>
    %75 = arith.addf %73, %74 : vector<1x128xf32>
    %c0_33 = arith.constant 0 : index
    %76 = memref.load %arg2[%c0_33] : memref<2xi32, #tpu.memory_space<smem>>
    %c1_34 = arith.constant 1 : index
    %77 = memref.load %arg2[%c1_34] : memref<2xi32, #tpu.memory_space<smem>>
    %78 = tpu.iota {dimensions = array<i32: 1>} : vector<1x128xi32>
    %79 = vector.broadcast %76 : i32 to vector<1x128xi32>
    %80 = arith.cmpi sge, %78, %79 : vector<1x128xi32>
    %81 = arith.addi %76, %77 : i32
    %82 = vector.broadcast %81 : i32 to vector<1x128xi32>
    %83 = arith.cmpi slt, %78, %82 : vector<1x128xi32>
    %84 = arith.andi %80, %83 : vector<1x128xi1>
    %cst_35 = arith.constant -1.000000e+30 : f32
    %85 = vector.broadcast %cst_35 : f32 to vector<1x128xf32>
    %86 = arith.select %84, %75, %85 : vector<1x128xi1>, vector<1x128xf32>
    %cst_36 = arith.constant dense<0xFF800000> : vector<1xf32>
    %87 = vector.multi_reduction <maximumf>, %86, %cst_36 [1] : vector<1x128xf32> to vector<1xf32>
    %88 = vector.shape_cast %87 : vector<1xf32> to vector<1x1xf32>
    %89 = vector.broadcast %88 : vector<1x1xf32> to vector<1x128xf32>
    %90 = arith.subf %86, %89 : vector<1x128xf32>
    %91 = math.exp %90 : vector<1x128xf32>
    %cst_37 = arith.constant 0.000000e+00 : f32
    %92 = vector.broadcast %cst_37 : f32 to vector<1x128xf32>
    %93 = arith.select %84, %91, %92 : vector<1x128xi1>, vector<1x128xf32>
    %cst_38 = arith.constant dense<0.000000e+00> : vector<1xf32>
    %94 = vector.multi_reduction <add>, %93, %cst_38 [1] : vector<1x128xf32> to vector<1xf32>
    %95 = vector.shape_cast %94 : vector<1xf32> to vector<1x1xf32>
    %96 = tpu.reciprocal %95 : vector<1x1xf32> -> vector<1x1xf32>
    %97 = vector.broadcast %96 : vector<1x1xf32> to vector<1x128xf32>
    %98 = arith.mulf %93, %97 : vector<1x128xf32>
    %c0_39 = arith.constant 0 : index
    %c0_40 = arith.constant 0 : index
    %99 = vector.load %arg9[%c0_39, %c0_40] : memref<1x128xf32, #tpu.memory_space<vmem>>, vector<1x128xf32>
    tpu.vector_store %arg9[%c0_39, %c0_40], %98 {strides = array<i32>} : memref<1x128xf32, #tpu.memory_space<vmem>>, vector<1x128xf32>,
    return
  }
  func.func @transform_0(%arg0: i32, %arg1: memref<1xi32, #tpu.memory_space<smem>>, %arg2: memref<2xi32, #tpu.memory_space<smem>>) -> (i32, i32, i32) {
    %c0 = arith.constant 0 : index
    %0 = memref.load %arg1[%c0] : memref<1xi32, #tpu.memory_space<smem>>
    %c0_i32 = arith.constant 0 : i32
    %c0_i32_0 = arith.constant 0 : i32
    %c0_i32_1 = arith.constant 0 : i32
    return %0, %c0_i32, %c0_i32_0 : i32, i32, i32
  }
  func.func @transform_1(%arg0: i32, %arg1: memref<1xi32, #tpu.memory_space<smem>>, %arg2: memref<2xi32, #tpu.memory_space<smem>>) -> (i32, i32) {
    %c0_i32 = arith.constant 0 : i32
    %c0_i32_0 = arith.constant 0 : i32
    %c0_i32_1 = arith.constant 0 : i32
    return %c0_i32, %c0_i32_0 : i32, i32
  }
  func.func @transform_2(%arg0: i32, %arg1: memref<1xi32, #tpu.memory_space<smem>>, %arg2: memref<2xi32, #tpu.memory_space<smem>>) -> (i32, i32, i32) {
    %c0_i32 = arith.constant 0 : i32
    %c0_i32_0 = arith.constant 0 : i32
    %c0_i32_1 = arith.constant 0 : i32
    %c0_i32_2 = arith.constant 0 : i32
    return %c0_i32, %c0_i32_0, %c0_i32_1 : i32, i32, i32
  }
  func.func @transform_3(%arg0: i32, %arg1: memref<1xi32, #tpu.memory_space<smem>>, %arg2: memref<2xi32, #tpu.memory_space<smem>>) -> (i32, i32, i32) {
    %c0_i32 = arith.constant 0 : i32
    %c0_i32_0 = arith.constant 0 : i32
    %c0_i32_1 = arith.constant 0 : i32
    %c0_i32_2 = arith.constant 0 : i32
    return %c0_i32, %c0_i32_0, %c0_i32_1 : i32, i32, i32
  }
  func.func @transform_4(%arg0: i32, %arg1: memref<1xi32, #tpu.memory_space<smem>>, %arg2: memref<2xi32, #tpu.memory_space<smem>>) -> (i32, i32) {
    %c0_i32 = arith.constant 0 : i32
    %c0_i32_0 = arith.constant 0 : i32
    %c0_i32_1 = arith.constant 0 : i32
    return %c0_i32, %c0_i32_0 : i32, i32
  }
  func.func @transform_5(%arg0: i32, %arg1: memref<1xi32, #tpu.memory_space<smem>>, %arg2: memref<2xi32, #tpu.memory_space<smem>>) -> (i32, i32) {
    %c0_i32 = arith.constant 0 : i32
    %c0_i32_0 = arith.constant 0 : i32
    %c0_i32_1 = arith.constant 0 : i32
    return %c0_i32, %c0_i32_0 : i32, i32
  }
  func.func @transform_6(%arg0: i32, %arg1: memref<1xi32, #tpu.memory_space<smem>>, %arg2: memref<2xi32, #tpu.memory_space<smem>>) -> (i32, i32) {
    %c0_i32 = arith.constant 0 : i32
    %c0_i32_0 = arith.constant 0 : i32
    %c0_i32_1 = arith.constant 0 : i32
    return %c0_i32, %c0_i32_0 : i32, i32
  }
  func.func @transform_7(%arg0: i32, %arg1: memref<1xi32, #tpu.memory_space<smem>>, %arg2: memref<2xi32, #tpu.memory_space<smem>>) -> (i32, i32) {
    %c0_i32 = arith.constant 0 : i32
    %c0_i32_0 = arith.constant 0 : i32
    %c0_i32_1 = arith.constant 0 : i32
    return %c0_i32, %c0_i32_0 : i32, i32
  }
}

</mosaic_0001>

<bundles_post_ra>
// kernel: tpu_custom_call.1
= control target key start
LH: loop header
LB: loop body
LE: loop exit
PB: predicated region body
PF: predicated region fallthrough
CT: control target
= control target key end

     0   :  { %s1467_s30 = smov [#allocation4]   ;;  %s1626_s0 = inlined_call_operand.<no memory space> [shape: s32[1], index: 0, kind: input, shape index: {}]   ;;  %s1627_s1 = inlined_call_operand.hbm [shape: s32[2], index: 1, kind: input, shape index: {}]   ;;  %s1628_s2 = inlined_call_operand.hbm [shape: f32[12,1,128], index: 2, kind: input, shape index: {}]   ;;  %s1629_s3 = inlined_call_operand.hbm [shape: f32[2,128], index: 3, kind: input, shape index: {}]   ;;  %s1630_s4 = inlined_call_operand.hbm [shape: f32[2,256,768], index: 4, kind: input, shape index: {}]   ;;  %s1631_s5 = inlined_call_operand.hbm [shape: f32[2,1,768], index: 5, kind: input, shape index: {}]   ;;  %s1632_s6 = inlined_call_operand.hbm [shape: f32[128,128], index: 6, kind: input, shape index: {}]   ;;  %s1633_s7 = inlined_call_operand.hbm [shape: f32[1,128], index: 7, kind: input, shape index: {}]   ;;  %s1634_s8 = inlined_call_operand.hbm [shape: f32[1,128], index: 8, kind: output, shape index: {0}]   ;;  %s1635_s9 = inlined_call_operand.hbm [shape: f32[2,128], index: 9, kind: output, shape index: {1}]  }
   0x1   :  { %17 = dma.hbm_to_smem %s1627_s1, 16, %s1467_s30, [#allocation2] }
   0x2   :  { %1453 = dma.done.wait [#allocation2], 16 }
   0x3   :  { %1454 = vsyncadd [#allocation2], 4294967280 }
   0x4   :  { %19 = sfence }
   0x5   :  { %20 = vsyncpa [#allocation6], 0 }
   0x6   :  { %21 = vsyncpa [#allocation9], 0 }
   0x7   :  { %22 = vsyncpa [#allocation12], 0 }
   0x8   :  { %23 = vsyncpa [#allocation15], 0 }
   0x9   :  { %24 = vsyncpa [#allocation7], 0 }
   0xa   :  { %25 = vsyncpa [#allocation18], 0  ;;  %s1468_s12 = smov [#allocation8]   ;;  %s1469_s14 = smov [#allocation11]  }
   0xb   :  { %s45_s13 = sshll.u32 %s1468_s12, 4  ;;  %s66_s15 = sshll.u32 %s1469_s14, 4  ;;  %s46_s13 = int_to_ptr.vmem [resolvable:$true] %s45_s13  ;;  %s67_s15 = int_to_ptr.vmem [resolvable:$true] %s66_s15 }
   0xc   :  { %s1299_s16 = scalar_lea.vmem %s46_s13, 32  ;;  %p1304_p1 = scmp.lt.s32.totalorder %s46_s13, %s46_s13 }
   0xd   :  { %p1300_p0 = scmp.ne.s32.totalorder %s46_s13, %s1299_s16  ;;  %p1305_p2 = scmp.lt.s32.totalorder %s1299_s16, %s1299_s16 }
   0xf   :  { %p1306_p3 = por %p1305_p2, %p1304_p1 }
  0x11   :  { %p1307_p4 = pnand %p1306_p3, %p1300_p0 }
  0x13   :  { %1310 = shalt.err (!%p1307_p4)
}
  0x14   :  { %48 = dma.hbm_to_vmem [thread:$0]  %s1629_s3, 32, %s46_s13, [#allocation9]  }
  0x15   :  { %s1319_s18 = scalar_lea.vmem %s67_s15, 192  ;;  %p1324_p6 = scmp.lt.s32.totalorder %s67_s15, %s67_s15 }
  0x16   :  { %p1320_p5 = scmp.ne.s32.totalorder %s67_s15, %s1319_s18  ;;  %p1325_p7 = scmp.lt.s32.totalorder %s1319_s18, %s1319_s18 }
  0x18   :  { %p1326_p8 = por %p1325_p7, %p1324_p6 }
  0x1a   :  { %p1327_p9 = pnand %p1326_p8, %p1320_p5 }
  0x1c   :  { %1330 = shalt.err (!%p1327_p9)
}
  0x1d   :  { %s1470_s19 = smov 96   ;;  %s1471_s20 = smov 6  }
  0x1e   :  { %72 = dma.hbm_to_vmem [thread:$0]  %s1631_s5, 192, %s67_s15, [#allocation12], %s1470_s19, %s1470_s19, %s1471_s20  }
  0x1f   :  { %s1183_s25 = sshll.u32 %s1626_s0, 4  ;;  %s1472_s28 = smov [#allocation5]  }
  0x20   :  { %s33_s3 = scalar_lea.hbm %s1628_s2, %s1183_s25  ;;  %s35_s29 = sshll.u32 %s1472_s28, 4  ;;  %s36_s29 = int_to_ptr.vmem [resolvable:$true] %s35_s29 }
  0x21   :  { %s1331_s30 = scalar_lea.hbm %s33_s3, 16  ;;  %s1333_s12 = scalar_lea.hbm %s1628_s2, 192 }
  0x22   :  { %p1332_p10 = scmp.ne.s32.totalorder %s33_s3, %s1331_s30  ;;  %p1334_p11 = scmp.lt.s32.totalorder %s33_s3, %s1628_s2 }
  0x23   :  { %p1335_p12 = scmp.lt.s32.totalorder %s1333_s12, %s1331_s30 }
  0x25   :  { %p1336_p13 = por %p1335_p12, %p1334_p11 }
  0x27   :  { %p1337_p0 = pnand %p1336_p13, %p1332_p10 }
  0x29   :  { %1340 = shalt.err (!%p1337_p0)
}
  0x2a   :  { %s1341_s0 = scalar_lea.vmem %s36_s29, 16  ;;  %s1345_s5 = scalar_lea.vmem %s36_s29, 32 }
  0x2b   :  { %p1342_p1 = scmp.ne.s32.totalorder %s36_s29, %s1341_s0  ;;  %p1346_p2 = scmp.lt.s32.totalorder %s36_s29, %s36_s29 }
  0x2c   :  { %p1347_p3 = scmp.lt.s32.totalorder %s1345_s5, %s1341_s0 }
  0x2e   :  { %p1348_p4 = por %p1347_p3, %p1346_p2 }
  0x30   :  { %p1349_p5 = pnand %p1348_p4, %p1342_p1 }
  0x32   :  { %1352 = shalt.err (!%p1349_p5)
}
  0x33   :  { %38 = dma.hbm_to_vmem [thread:$0]  %s33_s3, 16, %s36_s29, [#allocation6]  }
  0x34   :  { %s1473_s15 = smov [#allocation10]  }
  0x35   :  { %s54_s16 = sshll.u32 %s1473_s15, 4  ;;  %s55_s16 = int_to_ptr.vmem [resolvable:$true] %s54_s16 }
  0x36   :  { %s1361_s1 = scalar_lea.vmem %s55_s16, 49152  ;;  %p1366_p7 = scmp.lt.s32.totalorder %s55_s16, %s55_s16 }
  0x37   :  { %p1362_p6 = scmp.ne.s32.totalorder %s55_s16, %s1361_s1  ;;  %p1367_p8 = scmp.lt.s32.totalorder %s1361_s1, %s1361_s1 }
  0x39   :  { %p1368_p9 = por %p1367_p8, %p1366_p7 }
  0x3b   :  { %p1369_p11 = pnand %p1368_p9, %p1362_p6 }
  0x3d   :  { %1372 = shalt.err (!%p1369_p11)
}
  0x3e   :  { %s1474_s2 = smov 768   ;;  %s1475_s17 = smov 48  }
  0x3f   :  { %60 = dma.hbm_to_vmem [thread:$0]  %s1630_s4, 49152, %s55_s16, [#allocation9], %s1474_s2, %s1474_s2, %s1475_s17  }
  0x40   :  { %s1476_s20 = smov [#allocation13]  }
  0x41   :  { %s78_s21 = sshll.u32 %s1476_s20, 4  ;;  %s79_s21 = int_to_ptr.vmem [resolvable:$true] %s78_s21 }
  0x42   :  { %s1381_s22 = scalar_lea.vmem %s79_s21, 2048  ;;  %p1386_p12 = scmp.lt.s32.totalorder %s79_s21, %s79_s21 }
  0x43   :  { %p1382_p10 = scmp.ne.s32.totalorder %s79_s21, %s1381_s22  ;;  %p1387_p13 = scmp.lt.s32.totalorder %s1381_s22, %s1381_s22 }
  0x45   :  { %p1388_p0 = por %p1387_p13, %p1386_p12 }
  0x47   :  { %p1389_p1 = pnand %p1388_p0, %p1382_p10 }
  0x49   :  { %1392 = shalt.err (!%p1389_p1)
}
  0x4a   :  { %s1477_s23 = smov 128   ;;  %s1478_s24 = smov 8  }
  0x4b   :  { %84 = dma.hbm_to_vmem [thread:$0]  %s1632_s6, 2048, %s79_s21, [#allocation12], %s1477_s23, %s1477_s23, %s1478_s24  }
  0x4c   :  { %s1479_s27 = smov [#allocation14]  }
  0x4d   :  { %s91_s3 = sshll.u32 %s1479_s27, 4  ;;  %s92_s3 = int_to_ptr.vmem [resolvable:$true] %s91_s3 }
  0x4e   :  { %s1401_s4 = scalar_lea.vmem %s92_s3, 16  ;;  %s1405_s28 = scalar_lea.vmem %s92_s3, 32 }
  0x4f   :  { %p1402_p2 = scmp.ne.s32.totalorder %s92_s3, %s1401_s4  ;;  %p1406_p3 = scmp.lt.s32.totalorder %s92_s3, %s92_s3 }
  0x50   :  { %p1407_p4 = scmp.lt.s32.totalorder %s1405_s28, %s1401_s4 }
  0x52   :  { %p1408_p5 = por %p1407_p4, %p1406_p3 }
  0x54   :  { %p1409_p6 = pnand %p1408_p5, %p1402_p2 }
  0x56   :  { %1412 = shalt.err (!%p1409_p6)
}
  0x57   :  { %94 = dma.hbm_to_vmem [thread:$0]  %s1633_s7, 16, %s92_s3, [#allocation15]  }
  0x58   :  { %1455 = dma.done.wait [#allocation6], 16  }
  0x59   :  { %1456 = vsyncadd [#allocation6], 4294967280 }
  0x5a   :  { %1457 = dma.done.wait [#allocation9], 49184  }
  0x5b   :  { %1458 = vsyncadd [#allocation9], 4294918112 }
  0x5c   :  { %1459 = dma.done.wait [#allocation12], 2240  }
  0x5d   :  { %1460 = vsyncadd [#allocation12], 4294965056 }
  0x5e   :  { %1461 = dma.done.wait [#allocation15], 16  }
  0x5f   :  { %1462 = vsyncadd [#allocation15], 4294967280  ;;  %v207_v0 = vld [vmem:[#allocation10 + $0x2d8] sm:$0xff]  ;;  %v206_v1 = vld [vmem:[#allocation10 + $0x2d0] sm:$0xff]  ;;  %vm1481_vm0 = vmmov 0   ;;  %s1124_s6 = sld [smem:[#allocation4]] }
  0x60   :  { %v201_v2 = vld [vmem:[#allocation10 + $0x2a8] sm:$0xff]  ;;  %340 = vmatprep.subr.mxu0 %v207_v0  ;;  %v200_v3 = vld [vmem:[#allocation10 + $0x2a0] sm:$0xff]  ;;  %v195_v4 = vld [vmem:[#allocation10 + $0x278] sm:$0xff]  ;;  %s1188_s7 = sld [smem:[#allocation4 + $0x1]]  ;;  %vm1135_vm4 = vcmask 1040384   ;;  %s1482_s11 = smov [#allocation17]  }
  0x61   :  { %341 = vmatpush1.msra.mxu0 %v206_v1  ;;  %v194_v5 = vld [vmem:[#allocation10 + $0x270] sm:$0xff]  ;;  %v189_v6 = vld [vmem:[#allocation10 + $0x248] sm:$0xff]  ;;  %v188_v7 = vld [vmem:[#allocation10 + $0x240] sm:$0xff]  ;;  %s1165_s12 = sshll.u32 %s1482_s11, 4  ;;  %s1166_s12 = int_to_ptr.vmem [resolvable:$true] %s1165_s12 }
  0x62   :  { %342 = vmatprep.subr.mxu0 %v201_v2  ;;  %v183_v8 = vld [vmem:[#allocation10 + $0x218] sm:$0xff]  ;;  %v182_v9 = vld [vmem:[#allocation10 + $0x210] sm:$0xff]  ;;  %v177_v10 = vld [vmem:[#allocation10 + $0x1e8] sm:$0xff]  ;;  %s1413_s13 = scalar_lea.vmem %s1166_s12, 32  ;;  %p1418_p8 = scmp.lt.s32.totalorder %s1166_s12, %s1166_s12 }
  0x63   :  { %343 = vmatpush1.msra.mxu0 %v200_v3  ;;  %v176_v11 = vld [vmem:[#allocation10 + $0x1e0] sm:$0xff]  ;;  %v171_v12 = vld [vmem:[#allocation10 + $0x1b8] sm:$0xff]  ;;  %v170_v13 = vld [vmem:[#allocation10 + $0x1b0] sm:$0xff]  ;;  %p1414_p7 = scmp.ne.s32.totalorder %s1166_s12, %s1413_s13  ;;  %p1419_p9 = scmp.lt.s32.totalorder %s1413_s13, %s1413_s13 }
  0x64   :  { %344 = vmatprep.subr.mxu0 %v195_v4  ;;  %v165_v14 = vld [vmem:[#allocation10 + $0x188] sm:$0xff]  ;;  %v164_v15 = vld [vmem:[#allocation10 + $0x180] sm:$0xff]  ;;  %v159_v16 = vld [vmem:[#allocation10 + $0x158] sm:$0xff] }
  0x65   :  { %345 = vmatpush1.msra.mxu0 %v194_v5  ;;  %v158_v17 = vld [vmem:[#allocation10 + $0x150] sm:$0xff]  ;;  %v209_v18 = vld [vmem:[#allocation10 + $0x2e8] sm:$0xff]  ;;  %v208_v19 = vld [vmem:[#allocation10 + $0x2e0] sm:$0xff]  ;;  %p1420_p11 = por %p1419_p9, %p1418_p8 }
  0x66   :  { %346 = vmatprep.subr.mxu0 %v189_v6  ;;  %v153_v20 = vld [vmem:[#allocation10 + $0x128] sm:$0xff]  ;;  %411 = vmatprep.subr.mxu1 %v209_v18  ;;  %v203_v21 = vld [vmem:[#allocation10 + $0x2b8] sm:$0xff]  ;;  %v152_v22 = vld [vmem:[#allocation10 + $0x120] sm:$0xff]  ;;  %s1130_s10 = sadd.s32 %s1188_s7, %s1124_s6 }
  0x67   :  { %347 = vmatpush1.msra.mxu0 %v188_v7  ;;  %412 = vmatpush1.msra.mxu1 %v208_v19  ;;  %v202_v23 = vld [vmem:[#allocation10 + $0x2b0] sm:$0xff]  ;;  %v197_v24 = vld [vmem:[#allocation10 + $0x288] sm:$0xff]  ;;  %v147_v25 = vld [vmem:[#allocation10 + $0xf8] sm:$0xff]  ;;  %p1421_p10 = pnand %p1420_p11, %p1414_p7 }
  0x68   :  { %348 = vmatprep.subr.mxu0 %v183_v8  ;;  %413 = vmatprep.subr.mxu1 %v203_v21  ;;  %v196_v26 = vld [vmem:[#allocation10 + $0x280] sm:$0xff]  ;;  %v146_v27 = vld [vmem:[#allocation10 + $0xf0] sm:$0xff]  ;;  %v191_v28 = vld [vmem:[#allocation10 + $0x258] sm:$0xff] }
  0x69   :  { %349 = vmatpush1.msra.mxu0 %v182_v9  ;;  %414 = vmatpush1.msra.mxu1 %v202_v23  ;;  %v141_v29 = vld [vmem:[#allocation10 + $0xc8] sm:$0xff]  ;;  %v190_v30 = vld [vmem:[#allocation10 + $0x250] sm:$0xff]  ;;  %v140_v31 = vld [vmem:[#allocation10 + $0xc0] sm:$0xff] }
  0x6a   :  { %350 = vmatprep.subr.mxu0 %v177_v10  ;;  %415 = vmatprep.subr.mxu1 %v197_v24  ;;  %v185_v32 = vld [vmem:[#allocation10 + $0x228] sm:$0xff]  ;;  %v135_v33 = vld [vmem:[#allocation10 + $0x98] sm:$0xff]  ;;  %v184_v34 = vld [vmem:[#allocation10 + $0x220] sm:$0xff] }
  0x6b   :  { %351 = vmatpush1.msra.mxu0 %v176_v11  ;;  %416 = vmatpush1.msra.mxu1 %v196_v26  ;;  %v134_v35 = vld [vmem:[#allocation10 + $0x90] sm:$0xff]  ;;  %v179_v36 = vld [vmem:[#allocation10 + $0x1f8] sm:$0xff]  ;;  %v129_v37 = vld [vmem:[#allocation10 + $0x68] sm:$0xff] }
  0x6c   :  { %352 = vmatprep.subr.mxu0 %v171_v12  ;;  %417 = vmatprep.subr.mxu1 %v191_v28  ;;  %v178_v38 = vld [vmem:[#allocation10 + $0x1f0] sm:$0xff]  ;;  %v128_v39 = vld [vmem:[#allocation10 + $0x60] sm:$0xff]  ;;  %v173_v40 = vld [vmem:[#allocation10 + $0x1c8] sm:$0xff] }
  0x6d   :  { %353 = vmatpush1.msra.mxu0 %v170_v13  ;;  %418 = vmatpush1.msra.mxu1 %v190_v30  ;;  %v123_v41 = vld [vmem:[#allocation10 + $0x38] sm:$0xff]  ;;  %v172_v42 = vld [vmem:[#allocation10 + $0x1c0] sm:$0xff]  ;;  %v122_v43 = vld [vmem:[#allocation10 + $0x30] sm:$0xff] }
  0x6e   :  { %354 = vmatprep.subr.mxu0 %v165_v14  ;;  %419 = vmatprep.subr.mxu1 %v185_v32  ;;  %v167_v44 = vld [vmem:[#allocation10 + $0x198] sm:$0xff]  ;;  %v117_v45 = vld [vmem:[#allocation10 + $0x8] sm:$0xff]  ;;  %v166_v46 = vld [vmem:[#allocation10 + $0x190] sm:$0xff] }
  0x6f   :  { %355 = vmatpush1.msra.mxu0 %v164_v15  ;;  %420 = vmatpush1.msra.mxu1 %v184_v34  ;;  %v116_v47 = vld [vmem:[#allocation10] sm:$0xff]  ;;  %v161_v48 = vld [vmem:[#allocation10 + $0x168] sm:$0xff]  ;;  %v303_v49 = vld [vmem:[#allocation10 + $0x5d8] sm:$0xff] }
  0x70   :  { %356 = vmatprep.subr.mxu0 %v159_v16  ;;  %421 = vmatprep.subr.mxu1 %v179_v36  ;;  %v160_v50 = vld [vmem:[#allocation10 + $0x160] sm:$0xff]  ;;  %v302_v51 = vld [vmem:[#allocation10 + $0x5d0] sm:$0xff]  ;;  %v155_v52 = vld [vmem:[#allocation10 + $0x138] sm:$0xff] }
  0x71   :  { %357 = vmatpush1.msra.mxu0 %v158_v17  ;;  %422 = vmatpush1.msra.mxu1 %v178_v38  ;;  %v297_v53 = vld [vmem:[#allocation10 + $0x5a8] sm:$0xff]  ;;  %v1564_v54 = vld [vmem:[#allocation8] sm:$0x1]  ;;  %v296_v55 = vld [vmem:[#allocation10 + $0x5a0] sm:$0xff] }
  0x72   :  { %358 = vmatprep.subr.mxu0 %v153_v20  ;;  %423 = vmatprep.subr.mxu1 %v173_v40  ;;  %v154_v56 = vld [vmem:[#allocation10 + $0x130] sm:$0xff]  ;;  %v291_v57 = vld [vmem:[#allocation10 + $0x578] sm:$0xff]  ;;  %v149_v58 = vld [vmem:[#allocation10 + $0x108] sm:$0xff] }
  0x73   :  { %359 = vmatpush1.msra.mxu0 %v152_v22  ;;  %424 = vmatpush1.msra.mxu1 %v172_v42  ;;  %v290_v59 = vld [vmem:[#allocation10 + $0x570] sm:$0xff]  ;;  %v148_v60 = vld [vmem:[#allocation10 + $0x100] sm:$0xff]  ;;  %v285_v61 = vld [vmem:[#allocation10 + $0x548] sm:$0xff] }
  0x74   :  { %360 = vmatprep.subr.mxu0 %v147_v25  ;;  %425 = vmatprep.subr.mxu1 %v167_v44  ;;  %v143_v62 = vld [vmem:[#allocation10 + $0xd8] sm:$0xff]  ;;  %v284_v63 = vld [vmem:[#allocation10 + $0x540] sm:$0xff]  ;;  %v142_v0 = vld [vmem:[#allocation10 + $0xd0] sm:$0xff] }
  0x75   :  { %361 = vmatpush1.msra.mxu0 %v146_v27  ;;  %426 = vmatpush1.msra.mxu1 %v166_v46  ;;  %v279_v1 = vld [vmem:[#allocation10 + $0x518] sm:$0xff]  ;;  %v137_v2 = vld [vmem:[#allocation10 + $0xa8] sm:$0xff]  ;;  %v278_v3 = vld [vmem:[#allocation10 + $0x510] sm:$0xff] }
  0x76   :  { %362 = vmatprep.subr.mxu0 %v141_v29  ;;  %427 = vmatprep.subr.mxu1 %v161_v48  ;;  %v136_v4 = vld [vmem:[#allocation10 + $0xa0] sm:$0xff]  ;;  %v273_v5 = vld [vmem:[#allocation10 + $0x4e8] sm:$0xff]  ;;  %v131_v6 = vld [vmem:[#allocation10 + $0x78] sm:$0xff] }
  0x77   :  { %363 = vmatpush1.msra.mxu0 %v140_v31  ;;  %428 = vmatpush1.msra.mxu1 %v160_v50  ;;  %v272_v7 = vld [vmem:[#allocation10 + $0x4e0] sm:$0xff]  ;;  %v130_v8 = vld [vmem:[#allocation10 + $0x70] sm:$0xff]  ;;  %v267_v9 = vld [vmem:[#allocation10 + $0x4b8] sm:$0xff] }
  0x78   :  { %364 = vmatprep.subr.mxu0 %v135_v33  ;;  %429 = vmatprep.subr.mxu1 %v155_v52  ;;  %v125_v10 = vld [vmem:[#allocation10 + $0x48] sm:$0xff]  ;;  %v266_v11 = vld [vmem:[#allocation10 + $0x4b0] sm:$0xff]  ;;  %v124_v12 = vld [vmem:[#allocation10 + $0x40] sm:$0xff] }
  0x79   :  { %365 = vmatpush1.msra.mxu0 %v134_v35  ;;  %404 = vmatprep.mubr.f32.mxu0 %v1564_v54  ;;  %v261_v13 = vld [vmem:[#allocation10 + $0x488] sm:$0xff]  ;;  %v119_v14 = vld [vmem:[#allocation10 + $0x18] sm:$0xff]  ;;  %v260_v15 = vld [vmem:[#allocation10 + $0x480] sm:$0xff] }
  0x7a   :  { %366 = vmatprep.subr.mxu0 %v129_v37  ;;  %430 = vmatpush1.msra.mxu1 %v154_v56  ;;  %v118_v16 = vld [vmem:[#allocation10 + $0x10] sm:$0xff]  ;;  %v255_v17 = vld [vmem:[#allocation10 + $0x458] sm:$0xff]  ;;  %v305_v18 = vld [vmem:[#allocation10 + $0x5e8] sm:$0xff] }
  0x7b   :  { %367 = vmatpush1.msra.mxu0 %v128_v39  ;;  %431 = vmatprep.subr.mxu1 %v149_v58  ;;  %v254_v19 = vld [vmem:[#allocation10 + $0x450] sm:$0xff]  ;;  %v304_v20 = vld [vmem:[#allocation10 + $0x5e0] sm:$0xff]  ;;  %v249_v21 = vld [vmem:[#allocation10 + $0x428] sm:$0xff] }
  0x7c   :  { %368 = vmatprep.subr.mxu0 %v123_v41  ;;  %432 = vmatpush1.msra.mxu1 %v148_v60  ;;  %v299_v22 = vld [vmem:[#allocation10 + $0x5b8] sm:$0xff]  ;;  %v248_v23 = vld [vmem:[#allocation10 + $0x420] sm:$0xff]  ;;  %v298_v24 = vld [vmem:[#allocation10 + $0x5b0] sm:$0xff] }
  0x7d   :  { %369 = vmatpush1.msra.mxu0 %v122_v43  ;;  %433 = vmatprep.subr.mxu1 %v143_v62  ;;  %v243_v25 = vld [vmem:[#allocation10 + $0x3f8] sm:$0xff]  ;;  %v293_v26 = vld [vmem:[#allocation10 + $0x588] sm:$0xff]  ;;  %v242_v27 = vld [vmem:[#allocation10 + $0x3f0] sm:$0xff] }
  0x7e   :  { %370 = vmatprep.subr.mxu0 %v117_v45  ;;  %434 = vmatpush1.msra.mxu1 %v142_v0  ;;  %v292_v28 = vld [vmem:[#allocation10 + $0x580] sm:$0xff]  ;;  %v237_v29 = vld [vmem:[#allocation10 + $0x3c8] sm:$0xff]  ;;  %v287_v30 = vld [vmem:[#allocation10 + $0x558] sm:$0xff] }
  0x7f   :  { %371 = vmatpush1.msra.mxu0 %v116_v47  ;;  %435 = vmatprep.subr.mxu1 %v137_v2  ;;  %v236_v31 = vld [vmem:[#allocation10 + $0x3c0] sm:$0xff]  ;;  %v286_v32 = vld [vmem:[#allocation10 + $0x550] sm:$0xff]  ;;  %v231_v33 = vld [vmem:[#allocation10 + $0x398] sm:$0xff] }
  0x80   :  { %372 = vmatprep.subr.mxu0 %v303_v49  ;;  %436 = vmatpush1.msra.mxu1 %v136_v4  ;;  %v281_v34 = vld [vmem:[#allocation10 + $0x528] sm:$0xff]  ;;  %v230_v35 = vld [vmem:[#allocation10 + $0x390] sm:$0xff]  ;;  %v280_v36 = vld [vmem:[#allocation10 + $0x520] sm:$0xff] }
  0x81   :  { %373 = vmatpush2.msra.mxu0 %v302_v51  ;;  %437 = vmatprep.subr.mxu1 %v131_v6  ;;  %v225_v37 = vld [vmem:[#allocation10 + $0x368] sm:$0xff]  ;;  %v275_v38 = vld [vmem:[#allocation10 + $0x4f8] sm:$0xff]  ;;  %v224_v39 = vld [vmem:[#allocation10 + $0x360] sm:$0xff] }
  0x82   :  { %374 = vmatprep.subr.mxu0 %v297_v53  ;;  %438 = vmatpush1.msra.mxu1 %v130_v8  ;;  %v274_v40 = vld [vmem:[#allocation10 + $0x4f0] sm:$0xff]  ;;  %v219_v41 = vld [vmem:[#allocation10 + $0x338] sm:$0xff]  ;;  %v269_v42 = vld [vmem:[#allocation10 + $0x4c8] sm:$0xff] }
  0x83   :  { %375 = vmatpush2.msra.mxu0 %v296_v55  ;;  %439 = vmatprep.subr.mxu1 %v125_v10  ;;  %v218_v43 = vld [vmem:[#allocation10 + $0x330] sm:$0xff]  ;;  %v268_v44 = vld [vmem:[#allocation10 + $0x4c0] sm:$0xff]  ;;  %v213_v45 = vld [vmem:[#allocation10 + $0x308] sm:$0xff] }
  0x84   :  { %376 = vmatprep.subr.mxu0 %v291_v57  ;;  %440 = vmatpush1.msra.mxu1 %v124_v12  ;;  %v263_v46 = vld [vmem:[#allocation10 + $0x498] sm:$0xff]  ;;  %v212_v47 = vld [vmem:[#allocation10 + $0x300] sm:$0xff]  ;;  %v262_v48 = vld [vmem:[#allocation10 + $0x490] sm:$0xff] }
  0x85   :  { %377 = vmatpush2.msra.mxu0 %v290_v59  ;;  %441 = vmatprep.subr.mxu1 %v119_v14  ;;  %v1567_v49 = vld [vmem:[#allocation5] sm:$0x1]  ;;  %v210_v51 = vld [vmem:[#allocation10 + $0x2f0] sm:$0xff]  ;;  %v257_v52 = vld [vmem:[#allocation10 + $0x468] sm:$0xff] }
  0x86   :  { %378 = vmatprep.subr.mxu0 %v285_v61  ;;  %442 = vmatpush1.msra.mxu1 %v118_v16  ;;  %v211_v50 = vld [vmem:[#allocation10 + $0x2f8] sm:$0xff]  ;;  %v205_v53 = vld [vmem:[#allocation10 + $0x2c8] sm:$0xff]  ;;  %v256_v55 = vld [vmem:[#allocation10 + $0x460] sm:$0xff] }
  0x87   :  { %379 = vmatpush2.msra.mxu0 %v284_v63  ;;  %443 = vmatprep.subr.mxu1 %v305_v18  ;;  %v204_v56 = vld [vmem:[#allocation10 + $0x2c0] sm:$0xff]  ;;  %v251_v57 = vld [vmem:[#allocation10 + $0x438] sm:$0xff]  ;;  %v250_v59 = vld [vmem:[#allocation10 + $0x430] sm:$0xff] }
  0x88   :  { %380 = vmatprep.subr.mxu0 %v279_v1  ;;  %444 = vmatpush2.msra.mxu1 %v304_v20  ;;  %v199_v58 = vld [vmem:[#allocation10 + $0x298] sm:$0xff]  ;;  %v198_v60 = vld [vmem:[#allocation10 + $0x290] sm:$0xff]  ;;  %v245_v61 = vld [vmem:[#allocation10 + $0x408] sm:$0xff] }
  0x89   :  { %381 = vmatpush2.msra.mxu0 %v278_v3  ;;  %445 = vmatprep.subr.mxu1 %v299_v22  ;;  %v193_v62 = vld [vmem:[#allocation10 + $0x268] sm:$0xff]  ;;  %v244_v63 = vld [vmem:[#allocation10 + $0x400] sm:$0xff]  ;;  %v239_v1 = vld [vmem:[#allocation10 + $0x3d8] sm:$0xff] }
  0x8a   :  { %382 = vmatprep.subr.mxu0 %v273_v5  ;;  %446 = vmatpush2.msra.mxu1 %v298_v24  ;;  %v192_v0 = vld [vmem:[#allocation10 + $0x260] sm:$0xff]  ;;  %v187_v2 = vld [vmem:[#allocation10 + $0x238] sm:$0xff]  ;;  %v238_v3 = vld [vmem:[#allocation10 + $0x3d0] sm:$0xff] }
  0x8b   :  { %383 = vmatpush2.msra.mxu0 %v272_v7  ;;  %447 = vmatprep.subr.mxu1 %v293_v26  ;;  %v186_v4 = vld [vmem:[#allocation10 + $0x230] sm:$0xff]  ;;  %v233_v5 = vld [vmem:[#allocation10 + $0x3a8] sm:$0xff]  ;;  %v232_v7 = vld [vmem:[#allocation10 + $0x3a0] sm:$0xff] }
  0x8c   :  { %384 = vmatprep.subr.mxu0 %v267_v9  ;;  %448 = vmatpush2.msra.mxu1 %v292_v28  ;;  %v181_v6 = vld [vmem:[#allocation10 + $0x208] sm:$0xff]  ;;  %v180_v8 = vld [vmem:[#allocation10 + $0x200] sm:$0xff]  ;;  %v227_v9 = vld [vmem:[#allocation10 + $0x378] sm:$0xff] }
  0x8d   :  { %385 = vmatpush2.msra.mxu0 %v266_v11  ;;  %449 = vmatprep.subr.mxu1 %v287_v30  ;;  %v175_v10 = vld [vmem:[#allocation10 + $0x1d8] sm:$0xff]  ;;  %v226_v11 = vld [vmem:[#allocation10 + $0x370] sm:$0xff]  ;;  %v169_v14 = vld [vmem:[#allocation10 + $0x1a8] sm:$0xff] }
  0x8e   :  { %386 = vmatprep.subr.mxu0 %v261_v13  ;;  %450 = vmatpush2.msra.mxu1 %v286_v32  ;;  %v174_v12 = vld [vmem:[#allocation10 + $0x1d0] sm:$0xff]  ;;  %v221_v13 = vld [vmem:[#allocation10 + $0x348] sm:$0xff]  ;;  %v168_v16 = vld [vmem:[#allocation10 + $0x1a0] sm:$0xff] }
  0x8f   :  { %387 = vmatpush2.msra.mxu0 %v260_v15  ;;  %451 = vmatprep.subr.mxu1 %v281_v34  ;;  %v220_v15 = vld [vmem:[#allocation10 + $0x340] sm:$0xff]  ;;  %v163_v18 = vld [vmem:[#allocation10 + $0x178] sm:$0xff]  ;;  %v162_v20 = vld [vmem:[#allocation10 + $0x170] sm:$0xff] }
  0x90   :  { %388 = vmatprep.subr.mxu0 %v255_v17  ;;  %452 = vmatpush2.msra.mxu1 %v280_v36  ;;  %v215_v17 = vld [vmem:[#allocation10 + $0x318] sm:$0xff]  ;;  %v156_v22 = vld [vmem:[#allocation10 + $0x140] sm:$0xff]  ;;  %v150_v24 = vld [vmem:[#allocation10 + $0x110] sm:$0xff] }
  0x91   :  { %389 = vmatpush2.msra.mxu0 %v254_v19  ;;  %453 = vmatprep.subr.mxu1 %v275_v38  ;;  %v214_v19 = vld [vmem:[#allocation10 + $0x310] sm:$0xff]  ;;  %v144_v26 = vld [vmem:[#allocation10 + $0xe0] sm:$0xff]  ;;  %v301_v36 = vld [vmem:[#allocation10 + $0x5c8] sm:$0xff] }
  0x92   :  { %390 = vmatprep.subr.mxu0 %v249_v21  ;;  %454 = vmatpush2.msra.mxu1 %v274_v40  ;;  %v157_v21 = vld [vmem:[#allocation10 + $0x148] sm:$0xff]  ;;  %v138_v28 = vld [vmem:[#allocation10 + $0xb0] sm:$0xff]  ;;  %v132_v30 = vld [vmem:[#allocation10 + $0x80] sm:$0xff] }
  0x93   :  { %391 = vmatpush2.msra.mxu0 %v248_v23  ;;  %455 = vmatprep.subr.mxu1 %v269_v42  ;;  %v151_v23 = vld [vmem:[#allocation10 + $0x118] sm:$0xff]  ;;  %v126_v32 = vld [vmem:[#allocation10 + $0x50] sm:$0xff]  ;;  %v120_v34 = vld [vmem:[#allocation10 + $0x20] sm:$0xff] }
  0x94   :  { %392 = vmatprep.subr.mxu0 %v243_v25  ;;  %456 = vmatpush2.msra.mxu1 %v268_v44  ;;  %v145_v25 = vld [vmem:[#allocation10 + $0xe8] sm:$0xff]  ;;  %v295_v38 = vld [vmem:[#allocation10 + $0x598] sm:$0xff] }
  0x95   :  { %393 = vmatpush2.msra.mxu0 %v242_v27  ;;  %457 = vmatprep.subr.mxu1 %v263_v46  ;;  %v139_v27 = vld [vmem:[#allocation10 + $0xb8] sm:$0xff]  ;;  %v289_v40 = vld [vmem:[#allocation10 + $0x568] sm:$0xff] }
  0x96   :  { %394 = vmatprep.subr.mxu0 %v237_v29  ;;  %458 = vmatpush2.msra.mxu1 %v262_v48  ;;  %v133_v29 = vld [vmem:[#allocation10 + $0x88] sm:$0xff]  ;;  %v283_v42 = vld [vmem:[#allocation10 + $0x538] sm:$0xff] }
  0x97   :  { %395 = vmatpush2.msra.mxu0 %v236_v31  ;;  %459 = vmatprep.subr.mxu1 %v257_v52  ;;  %v127_v31 = vld [vmem:[#allocation10 + $0x58] sm:$0xff]  ;;  %v277_v44 = vld [vmem:[#allocation10 + $0x508] sm:$0xff]  ;;  %v258_v52 = vld [vmem:[#allocation10 + $0x470] sm:$0xff] }
  0x98   :  { %396 = vmatprep.subr.mxu0 %v231_v33  ;;  %460 = vmatpush2.msra.mxu1 %v256_v55  ;;  %v121_v33 = vld [vmem:[#allocation10 + $0x28] sm:$0xff]  ;;  %v271_v46 = vld [vmem:[#allocation10 + $0x4d8] sm:$0xff]  ;;  %v252_v55 = vld [vmem:[#allocation10 + $0x440] sm:$0xff] }
  0x99   :  { %397 = vmatpush2.msra.mxu0 %v230_v35  ;;  %461 = vmatprep.subr.mxu1 %v251_v57  ;;  %v306_v35 = vld [vmem:[#allocation10 + $0x5f0] sm:$0xff]  ;;  %v265_v48 = vld [vmem:[#allocation10 + $0x4a8] sm:$0xff] }
  0x9a   :  { %398 = vmatprep.subr.mxu0 %v225_v37  ;;  %462 = vmatpush2.msra.mxu1 %v250_v59  ;;  %v300_v37 = vld [vmem:[#allocation10 + $0x5c0] sm:$0xff]  ;;  %v246_v57 = vld [vmem:[#allocation10 + $0x410] sm:$0xff] }
  0x9b   :  { %399 = vmatpush2.msra.mxu0 %v224_v39  ;;  %463 = vmatprep.subr.mxu1 %v245_v61  ;;  %v294_v39 = vld [vmem:[#allocation10 + $0x590] sm:$0xff]  ;;  %v240_v59 = vld [vmem:[#allocation10 + $0x3e0] sm:$0xff] }
  0x9c   :  { %400 = vmatprep.subr.mxu0 %v219_v41  ;;  %464 = vmatpush2.msra.mxu1 %v244_v63  ;;  %v288_v41 = vld [vmem:[#allocation10 + $0x560] sm:$0xff]  ;;  %v234_v61 = vld [vmem:[#allocation10 + $0x3b0] sm:$0xff] }
  0x9d   :  { %401 = vmatpush2.msra.mxu0 %v218_v43  ;;  %465 = vmatprep.subr.mxu1 %v239_v1  ;;  %v282_v43 = vld [vmem:[#allocation10 + $0x530] sm:$0xff]  ;;  %v228_v63 = vld [vmem:[#allocation10 + $0x380] sm:$0xff] }
  0x9e   :  { %402 = vmatprep.subr.mxu0 %v213_v45  ;;  %466 = vmatpush2.msra.mxu1 %v238_v3  ;;  %v276_v45 = vld [vmem:[#allocation10 + $0x500] sm:$0xff]  ;;  %v222_v1 = vld [vmem:[#allocation10 + $0x350] sm:$0xff] }
  0x9f   :  { %403 = vmatpush2.msra.mxu0 %v212_v47  ;;  %467 = vmatprep.subr.mxu1 %v233_v5  ;;  %v270_v47 = vld [vmem:[#allocation10 + $0x4d0] sm:$0xff]  ;;  %v216_v3 = vld [vmem:[#allocation10 + $0x320] sm:$0xff] }
  0xa0   :  { %405 = vmatmul.mubr.f32.vlgmr.msra.gmra.mxu0 %v1567_v49  ;;  %482 = vmatprep.subr.mxu0 %v211_v50  ;;  %v264_v50 = vld [vmem:[#allocation10 + $0x4a0] sm:$0xff]  ;;  %v667_v5 = vld [vmem:[#allocation10 + $0x8d0] sm:$0xff] }
  0xa1   :  { %483 = vmatpush1.msra.mxu0 %v210_v51  ;;  %468 = vmatpush2.msra.mxu1 %v232_v7  ;;  %v259_v51 = vld [vmem:[#allocation10 + $0x478] sm:$0xff]  ;;  %v662_v7 = vld [vmem:[#allocation10 + $0x8a8] sm:$0xff] }
  0xa2   :  { %484 = vmatprep.subr.mxu0 %v205_v53  ;;  %469 = vmatprep.subr.mxu1 %v227_v9  ;;  %v253_v53 = vld [vmem:[#allocation10 + $0x448] sm:$0xff]  ;;  %v661_v9 = vld [vmem:[#allocation10 + $0x8a0] sm:$0xff] }
  0xa3   :  { %485 = vmatpush1.msra.mxu0 %v204_v56  ;;  %470 = vmatpush2.msra.mxu1 %v226_v11  ;;  %v247_v56 = vld [vmem:[#allocation10 + $0x418] sm:$0xff] }
  0xa4   :  { %486 = vmatprep.subr.mxu0 %v199_v58  ;;  %471 = vmatprep.subr.mxu1 %v221_v13  ;;  %v241_v58 = vld [vmem:[#allocation10 + $0x3e8] sm:$0xff]  ;;  %v656_v11 = vld [vmem:[#allocation10 + $0x878] sm:$0xff]  ;;  %v655_v13 = vld [vmem:[#allocation10 + $0x870] sm:$0xff] }
  0xa5   :  { %487 = vmatpush1.msra.mxu0 %v198_v60  ;;  %472 = vmatpush2.msra.mxu1 %v220_v15  ;;  %v235_v60 = vld [vmem:[#allocation10 + $0x3b8] sm:$0xff]  ;;  %v657_v15 = vld [vmem:[#allocation10 + $0x880] sm:$0xff] }
  0xa6   :  { %488 = vmatprep.subr.mxu0 %v193_v62  ;;  %473 = vmatprep.subr.mxu1 %v215_v17  ;;  %v229_v62 = vld [vmem:[#allocation10 + $0x388] sm:$0xff]  ;;  %v649_v17 = vld [vmem:[#allocation10 + $0x840] sm:$0xff] }
  0xa7   :  { %489 = vmatpush1.msra.mxu0 %v192_v0  ;;  %474 = vmatpush2.msra.mxu1 %v214_v19  ;;  %v223_v0 = vld [vmem:[#allocation10 + $0x358] sm:$0xff] }
  0xa8   :  { %490 = vmatprep.subr.mxu0 %v187_v2  ;;  %475 = vmatprep.mubr.f32.mxu1 %v1564_v54  ;;  %v217_v2 = vld [vmem:[#allocation10 + $0x328] sm:$0xff]  ;;  %v644_v19 = vld [vmem:[#allocation10 + $0x818] sm:$0xff] }
  0xa9   :  { %491 = vmatpush1.msra.mxu0 %v186_v4  ;;  %476 = vmatmul.mubr.f32.vlgmr.msra.gmra.mxu1 %v1567_v49  ;;  %v668_v4 = vld [vmem:[#allocation10 + $0x8d8] sm:$0xff] }
  0xaa   :  { %492 = vmatprep.subr.mxu0 %v181_v6  ;;  %546 = vmatprep.mubr.f32.mxu0 %v1564_v54  ;;  %v307_v54 = vld [vmem:[#allocation10 + $0x5f8] sm:$0xff]  ;;  %v670_v6 = vld [vmem:[#allocation10 + $0x8e8] sm:$0xff] }
  0xab   :  { %493 = vmatpush1.msra.mxu0 %v180_v8  ;;  %802 = vmatprep.subr.mxu1 %v668_v4  ;;  %v669_v8 = vld [vmem:[#allocation10 + $0x8e0] sm:$0xff]  ;;  %v764_v4 = vld [vmem:[#allocation10 + $0xbd8] sm:$0xff] }
  0xac   :  { %494 = vmatprep.subr.mxu0 %v175_v10  ;;  %803 = vmatpush1.msra.mxu1 %v667_v5  ;;  %v664_v10 = vld [vmem:[#allocation10 + $0x8b8] sm:$0xff]  ;;  %v766_v5 = vld [vmem:[#allocation10 + $0xbe8] sm:$0xff] }
  0xad   :  { %495 = vmatpush1.msra.mxu0 %v174_v12  ;;  %v663_v12 = vld [vmem:[#allocation10 + $0x8b0] sm:$0xff]  ;;  %804 = vmatprep.subr.mxu1 %v662_v7  ;;  %v765_v7 = vld [vmem:[#allocation10 + $0xbe0] sm:$0xff] }
  0xae   :  { %496 = vmatprep.subr.mxu0 %v169_v14  ;;  %v658_v14 = vld [vmem:[#allocation10 + $0x888] sm:$0xff]  ;;  %805 = vmatpush1.msra.mxu1 %v661_v9  ;;  %v760_v9 = vld [vmem:[#allocation10 + $0xbb8] sm:$0xff] }
  0xaf   :  { %497 = vmatpush1.msra.mxu0 %v168_v16  ;;  %v652_v16 = vld [vmem:[#allocation10 + $0x858] sm:$0xff]  ;;  %806 = vmatprep.subr.mxu1 %v656_v11  ;;  %v759_v11 = vld [vmem:[#allocation10 + $0xbb0] sm:$0xff] }
  0xb0   :  { %498 = vmatprep.subr.mxu0 %v163_v18  ;;  %v651_v18 = vld [vmem:[#allocation10 + $0x850] sm:$0xff]  ;;  %807 = vmatpush1.msra.mxu1 %v655_v13  ;;  %v754_v13 = vld [vmem:[#allocation10 + $0xb88] sm:$0xff] }
  0xb1   :  { %499 = vmatpush1.msra.mxu0 %v162_v20  ;;  %v646_v20 = vld [vmem:[#allocation10 + $0x828] sm:$0xff] }
  0xb2   :  { %500 = vmatprep.subr.mxu0 %v157_v21  ;;  %v643_v21 = vld [vmem:[#allocation10 + $0x810] sm:$0xff] }
  0xb3   :  { %501 = vmatpush1.msra.mxu0 %v156_v22  ;;  %v645_v22 = vld [vmem:[#allocation10 + $0x820] sm:$0xff] }
  0xb4   :  { %502 = vmatprep.subr.mxu0 %v151_v23  ;;  %v638_v23 = vld [vmem:[#allocation10 + $0x7e8] sm:$0xff] }
  0xb5   :  { %503 = vmatpush1.msra.mxu0 %v150_v24  ;;  %v640_v24 = vld [vmem:[#allocation10 + $0x7f8] sm:$0xff] }
  0xb6   :  { %504 = vmatprep.subr.mxu0 %v145_v25  ;;  %v637_v25 = vld [vmem:[#allocation10 + $0x7e0] sm:$0xff] }
  0xb7   :  { %505 = vmatpush1.msra.mxu0 %v144_v26  ;;  %v639_v26 = vld [vmem:[#allocation10 + $0x7f0] sm:$0xff] }
  0xb8   :  { %506 = vmatprep.subr.mxu0 %v139_v27  ;;  %v632_v27 = vld [vmem:[#allocation10 + $0x7b8] sm:$0xff] }
  0xb9   :  { %507 = vmatpush1.msra.mxu0 %v138_v28  ;;  %v634_v28 = vld [vmem:[#allocation10 + $0x7c8] sm:$0xff] }
  0xba   :  { %508 = vmatprep.subr.mxu0 %v133_v29  ;;  %v631_v29 = vld [vmem:[#allocation10 + $0x7b0] sm:$0xff] }
  0xbb   :  { %509 = vmatpush1.msra.mxu0 %v132_v30  ;;  %v633_v30 = vld [vmem:[#allocation10 + $0x7c0] sm:$0xff] }
  0xbc   :  { %510 = vmatprep.subr.mxu0 %v127_v31  ;;  %v626_v31 = vld [vmem:[#allocation10 + $0x788] sm:$0xff] }
  0xbd   :  { %511 = vmatpush1.msra.mxu0 %v126_v32  ;;  %v628_v32 = vld [vmem:[#allocation10 + $0x798] sm:$0xff] }
  0xbe   :  { %512 = vmatprep.subr.mxu0 %v121_v33  ;;  %v625_v33 = vld [vmem:[#allocation10 + $0x780] sm:$0xff] }
  0xbf   :  { %513 = vmatpush1.msra.mxu0 %v120_v34  ;;  %v627_v34 = vld [vmem:[#allocation10 + $0x790] sm:$0xff] }
  0xc0   :  { %514 = vmatprep.subr.mxu0 %v307_v54  ;;  %v620_v54 = vld [vmem:[#allocation10 + $0x758] sm:$0xff] }
  0xc1   :  { %515 = vmatpush2.msra.mxu0 %v306_v35  ;;  %v622_v35 = vld [vmem:[#allocation10 + $0x768] sm:$0xff] }
  0xc2   :  { %516 = vmatprep.subr.mxu0 %v301_v36  ;;  %v619_v36 = vld [vmem:[#allocation10 + $0x750] sm:$0xff] }
  0xc3   :  { %517 = vmatpush2.msra.mxu0 %v300_v37  ;;  %v621_v37 = vld [vmem:[#allocation10 + $0x760] sm:$0xff] }
  0xc4   :  { %518 = vmatprep.subr.mxu0 %v295_v38  ;;  %v614_v38 = vld [vmem:[#allocation10 + $0x728] sm:$0xff] }
  0xc5   :  { %519 = vmatpush2.msra.mxu0 %v294_v39  ;;  %v616_v39 = vld [vmem:[#allocation10 + $0x738] sm:$0xff] }
  0xc6   :  { %520 = vmatprep.subr.mxu0 %v289_v40  ;;  %v613_v40 = vld [vmem:[#allocation10 + $0x720] sm:$0xff] }
  0xc7   :  { %521 = vmatpush2.msra.mxu0 %v288_v41  ;;  %v608_v41 = vld [vmem:[#allocation10 + $0x6f8] sm:$0xff] }
  0xc8   :  { %522 = vmatprep.subr.mxu0 %v283_v42  ;;  %v615_v42 = vld [vmem:[#allocation10 + $0x730] sm:$0xff] }
  0xc9   :  { %523 = vmatpush2.msra.mxu0 %v282_v43  ;;  %v607_v43 = vld [vmem:[#allocation10 + $0x6f0] sm:$0xff] }
  0xca   :  { %524 = vmatprep.subr.mxu0 %v277_v44  ;;  %v610_v44 = vld [vmem:[#allocation10 + $0x708] sm:$0xff] }
  0xcb   :  { %525 = vmatpush2.msra.mxu0 %v276_v45  ;;  %v609_v45 = vld [vmem:[#allocation10 + $0x700] sm:$0xff] }
  0xcc   :  { %526 = vmatprep.subr.mxu0 %v271_v46  ;;  %v602_v46 = vld [vmem:[#allocation10 + $0x6c8] sm:$0xff] }
  0xcd   :  { %527 = vmatpush2.msra.mxu0 %v270_v47  ;;  %v604_v47 = vld [vmem:[#allocation10 + $0x6d8] sm:$0xff] }
  0xce   :  { %528 = vmatprep.subr.mxu0 %v265_v48  ;;  %v601_v48 = vld [vmem:[#allocation10 + $0x6c0] sm:$0xff] }
  0xcf   :  { %529 = vmatpush2.msra.mxu0 %v264_v50  ;;  %v603_v50 = vld [vmem:[#allocation10 + $0x6d0] sm:$0xff] }
  0xd0   :  { %530 = vmatprep.subr.mxu0 %v259_v51  ;;  %v596_v51 = vld [vmem:[#allocation10 + $0x698] sm:$0xff] }
  0xd1   :  { %531 = vmatpush2.msra.mxu0 %v258_v52  ;;  %v598_v52 = vld [vmem:[#allocation10 + $0x6a8] sm:$0xff] }
  0xd2   :  { %532 = vmatprep.subr.mxu0 %v253_v53  ;;  %v595_v53 = vld [vmem:[#allocation10 + $0x690] sm:$0xff] }
  0xd3   :  { %533 = vmatpush2.msra.mxu0 %v252_v55  ;;  %v597_v55 = vld [vmem:[#allocation10 + $0x6a0] sm:$0xff] }
  0xd4   :  { %534 = vmatprep.subr.mxu0 %v247_v56  ;;  %v590_v56 = vld [vmem:[#allocation10 + $0x668] sm:$0xff] }
  0xd5   :  { %535 = vmatpush2.msra.mxu0 %v246_v57  ;;  %v592_v57 = vld [vmem:[#allocation10 + $0x678] sm:$0xff] }
  0xd6   :  { %536 = vmatprep.subr.mxu0 %v241_v58  ;;  %v589_v58 = vld [vmem:[#allocation10 + $0x660] sm:$0xff] }
  0xd7   :  { %537 = vmatpush2.msra.mxu0 %v240_v59  ;;  %v591_v59 = vld [vmem:[#allocation10 + $0x670] sm:$0xff] }
  0xd8   :  { %538 = vmatprep.subr.mxu0 %v235_v60  ;;  %v584_v60 = vld [vmem:[#allocation10 + $0x638] sm:$0xff] }
  0xd9   :  { %539 = vmatpush2.msra.mxu0 %v234_v61  ;;  %v586_v61 = vld [vmem:[#allocation10 + $0x648] sm:$0xff] }
  0xda   :  { %540 = vmatprep.subr.mxu0 %v229_v62  ;;  %v583_v62 = vld [vmem:[#allocation10 + $0x630] sm:$0xff] }
  0xdb   :  { %541 = vmatpush2.msra.mxu0 %v228_v63  ;;  %v585_v63 = vld [vmem:[#allocation10 + $0x640] sm:$0xff] }
  0xdc   :  { %542 = vmatprep.subr.mxu0 %v223_v0  ;;  %v578_v0 = vld [vmem:[#allocation10 + $0x608] sm:$0xff] }
  0xdd   :  { %543 = vmatpush2.msra.mxu0 %v222_v1  ;;  %v580_v1 = vld [vmem:[#allocation10 + $0x618] sm:$0xff] }
  0xde   :  { %544 = vmatprep.subr.mxu0 %v217_v2  ;;  %v577_v2 = vld [vmem:[#allocation10 + $0x600] sm:$0xff] }
  0xdf   :  { %545 = vmatpush2.msra.mxu0 %v216_v3  ;;  %v579_v3 = vld [vmem:[#allocation10 + $0x610] sm:$0xff] }
  0xe0   :  { %547 = vmatmul.mubr.f32.vlgmr.msra.gmra.mxu0 %v1567_v49  ;;  %873 = vmatprep.subr.mxu0 %v670_v6  ;;  %v650_v49 = vld [vmem:[#allocation10 + $0x848] sm:$0xff]  ;;  %v763_v6 = vld [vmem:[#allocation10 + $0xbd0] sm:$0xff] }
  0xe1   :  { %874 = vmatpush1.msra.mxu0 %v669_v8  ;;  %808 = vmatprep.subr.mxu1 %v650_v49  ;;  %v758_v8 = vld [vmem:[#allocation10 + $0xba8] sm:$0xff] }
  0xe2   :  { %875 = vmatprep.subr.mxu0 %v664_v10  ;;  %809 = vmatpush1.msra.mxu1 %v649_v17  ;;  %v757_v10 = vld [vmem:[#allocation10 + $0xba0] sm:$0xff]  ;;  %v746_v49 = vld [vmem:[#allocation10 + $0xb48] sm:$0xff]  ;;  %v748_v17 = vld [vmem:[#allocation10 + $0xb58] sm:$0xff] }
  0xe3   :  { %876 = vmatpush1.msra.mxu0 %v663_v12  ;;  %810 = vmatprep.subr.mxu1 %v644_v19  ;;  %v752_v12 = vld [vmem:[#allocation10 + $0xb78] sm:$0xff]  ;;  %v747_v19 = vld [vmem:[#allocation10 + $0xb50] sm:$0xff] }
  0xe4   :  { %877 = vmatprep.subr.mxu0 %v658_v14  ;;  %811 = vmatpush1.msra.mxu1 %v643_v21  ;;  %v751_v14 = vld [vmem:[#allocation10 + $0xb70] sm:$0xff]  ;;  %v742_v21 = vld [vmem:[#allocation10 + $0xb28] sm:$0xff] }
  0xe5   :  { %878 = vmatpush1.msra.mxu0 %v657_v15  ;;  %812 = vmatprep.subr.mxu1 %v638_v23  ;;  %v753_v15 = vld [vmem:[#allocation10 + $0xb80] sm:$0xff] }
  0xe6   :  { %879 = vmatprep.subr.mxu0 %v652_v16  ;;  %813 = vmatpush1.msra.mxu1 %v637_v25  ;;  %v745_v16 = vld [vmem:[#allocation10 + $0xb40] sm:$0xff]  ;;  %v736_v25 = vld [vmem:[#allocation10 + $0xaf8] sm:$0xff] }
  0xe7   :  { %880 = vmatpush1.msra.mxu0 %v651_v18  ;;  %814 = vmatprep.subr.mxu1 %v632_v27  ;;  %v740_v18 = vld [vmem:[#allocation10 + $0xb18] sm:$0xff]  ;;  %v741_v23 = vld [vmem:[#allocation10 + $0xb20] sm:$0xff]  ;;  %v735_v27 = vld [vmem:[#allocation10 + $0xaf0] sm:$0xff] }
  0xe8   :  { %881 = vmatprep.subr.mxu0 %v646_v20  ;;  %815 = vmatpush1.msra.mxu1 %v631_v29  ;;  %v739_v20 = vld [vmem:[#allocation10 + $0xb10] sm:$0xff]  ;;  %v730_v29 = vld [vmem:[#allocation10 + $0xac8] sm:$0xff] }
  0xe9   :  { %882 = vmatpush1.msra.mxu0 %v645_v22  ;;  %816 = vmatprep.subr.mxu1 %v626_v31  ;;  %v734_v22 = vld [vmem:[#allocation10 + $0xae8] sm:$0xff]  ;;  %v729_v31 = vld [vmem:[#allocation10 + $0xac0] sm:$0xff] }
  0xea   :  { %883 = vmatprep.subr.mxu0 %v640_v24  ;;  %817 = vmatpush1.msra.mxu1 %v625_v33  ;;  %v733_v24 = vld [vmem:[#allocation10 + $0xae0] sm:$0xff]  ;;  %v724_v33 = vld [vmem:[#allocation10 + $0xa98] sm:$0xff] }
  0xeb   :  { %884 = vmatpush1.msra.mxu0 %v639_v26  ;;  %818 = vmatprep.subr.mxu1 %v620_v54  ;;  %v728_v26 = vld [vmem:[#allocation10 + $0xab8] sm:$0xff]  ;;  %v723_v54 = vld [vmem:[#allocation10 + $0xa90] sm:$0xff] }
  0xec   :  { %885 = vmatprep.subr.mxu0 %v634_v28  ;;  %819 = vmatpush1.msra.mxu1 %v619_v36  ;;  %v727_v28 = vld [vmem:[#allocation10 + $0xab0] sm:$0xff]  ;;  %v718_v36 = vld [vmem:[#allocation10 + $0xa68] sm:$0xff] }
  0xed   :  { %886 = vmatpush1.msra.mxu0 %v633_v30  ;;  %820 = vmatprep.subr.mxu1 %v614_v38  ;;  %v722_v30 = vld [vmem:[#allocation10 + $0xa88] sm:$0xff]  ;;  %v717_v38 = vld [vmem:[#allocation10 + $0xa60] sm:$0xff] }
  0xee   :  { %887 = vmatprep.subr.mxu0 %v628_v32  ;;  %821 = vmatpush1.msra.mxu1 %v613_v40  ;;  %v721_v32 = vld [vmem:[#allocation10 + $0xa80] sm:$0xff]  ;;  %v712_v40 = vld [vmem:[#allocation10 + $0xa38] sm:$0xff] }
  0xef   :  { %888 = vmatpush1.msra.mxu0 %v627_v34  ;;  %822 = vmatprep.subr.mxu1 %v608_v41  ;;  %v716_v34 = vld [vmem:[#allocation10 + $0xa58] sm:$0xff] }
  0xf0   :  { %889 = vmatprep.subr.mxu0 %v622_v35  ;;  %823 = vmatpush1.msra.mxu1 %v607_v43  ;;  %v715_v35 = vld [vmem:[#allocation10 + $0xa50] sm:$0xff]  ;;  %v704_v41 = vld [vmem:[#allocation10 + $0x9f8] sm:$0xff] }
  0xf1   :  { %890 = vmatpush1.msra.mxu0 %v621_v37  ;;  %824 = vmatprep.subr.mxu1 %v602_v46  ;;  %v710_v37 = vld [vmem:[#allocation10 + $0xa28] sm:$0xff]  ;;  %v703_v43 = vld [vmem:[#allocation10 + $0x9f0] sm:$0xff]  ;;  %v705_v46 = vld [vmem:[#allocation10 + $0xa00] sm:$0xff] }
  0xf2   :  { %891 = vmatprep.subr.mxu0 %v616_v39  ;;  %825 = vmatpush1.msra.mxu1 %v601_v48  ;;  %v709_v39 = vld [vmem:[#allocation10 + $0xa20] sm:$0xff]  ;;  %v700_v48 = vld [vmem:[#allocation10 + $0x9d8] sm:$0xff] }
  0xf3   :  { %892 = vmatpush1.msra.mxu0 %v615_v42  ;;  %826 = vmatprep.subr.mxu1 %v596_v51  ;;  %v711_v42 = vld [vmem:[#allocation10 + $0xa30] sm:$0xff] }
  0xf4   :  { %893 = vmatprep.subr.mxu0 %v610_v44  ;;  %827 = vmatpush1.msra.mxu1 %v595_v53  ;;  %v706_v44 = vld [vmem:[#allocation10 + $0xa08] sm:$0xff]  ;;  %v699_v51 = vld [vmem:[#allocation10 + $0x9d0] sm:$0xff] }
  0xf5   :  { %894 = vmatpush1.msra.mxu0 %v609_v45  ;;  %828 = vmatprep.subr.mxu1 %v590_v56  ;;  %v698_v45 = vld [vmem:[#allocation10 + $0x9c8] sm:$0xff]  ;;  %v693_v56 = vld [vmem:[#allocation10 + $0x9a0] sm:$0xff] }
  0xf6   :  { %895 = vmatprep.subr.mxu0 %v604_v47  ;;  %829 = vmatpush1.msra.mxu1 %v589_v58  ;;  %v697_v47 = vld [vmem:[#allocation10 + $0x9c0] sm:$0xff]  ;;  %v694_v53 = vld [vmem:[#allocation10 + $0x9a8] sm:$0xff]  ;;  %v688_v58 = vld [vmem:[#allocation10 + $0x978] sm:$0xff] }
  0xf7   :  { %896 = vmatpush1.msra.mxu0 %v603_v50  ;;  %830 = vmatprep.subr.mxu1 %v584_v60  ;;  %v692_v50 = vld [vmem:[#allocation10 + $0x998] sm:$0xff]  ;;  %v687_v60 = vld [vmem:[#allocation10 + $0x970] sm:$0xff] }
  0xf8   :  { %897 = vmatprep.subr.mxu0 %v598_v52  ;;  %831 = vmatpush1.msra.mxu1 %v583_v62  ;;  %v691_v52 = vld [vmem:[#allocation10 + $0x990] sm:$0xff]  ;;  %v682_v62 = vld [vmem:[#allocation10 + $0x948] sm:$0xff] }
  0xf9   :  { %898 = vmatpush1.msra.mxu0 %v597_v55  ;;  %832 = vmatprep.subr.mxu1 %v578_v0  ;;  %v686_v55 = vld [vmem:[#allocation10 + $0x968] sm:$0xff]  ;;  %v681_v0 = vld [vmem:[#allocation10 + $0x940] sm:$0xff] }
  0xfa   :  { %899 = vmatprep.subr.mxu0 %v592_v57  ;;  %833 = vmatpush1.msra.mxu1 %v577_v2  ;;  %v685_v57 = vld [vmem:[#allocation10 + $0x960] sm:$0xff]  ;;  %v676_v2 = vld [vmem:[#allocation10 + $0x918] sm:$0xff] }
  0xfb   :  { %900 = vmatpush1.msra.mxu0 %v591_v59  ;;  %834 = vmatprep.subr.mxu1 %v764_v4  ;;  %v680_v59 = vld [vmem:[#allocation10 + $0x938] sm:$0xff]  ;;  %v675_v4 = vld [vmem:[#allocation10 + $0x910] sm:$0xff] }
  0xfc   :  { %901 = vmatprep.subr.mxu0 %v586_v61  ;;  %835 = vmatpush2.msra.mxu1 %v763_v6  ;;  %v679_v61 = vld [vmem:[#allocation10 + $0x930] sm:$0xff]  ;;  %v310_v6 = vlaneseq }
  0xfd   :  { %902 = vmatpush1.msra.mxu0 %v585_v63  ;;  %836 = vmatprep.subr.mxu1 %v758_v8  ;;  %v674_v63 = vld [vmem:[#allocation10 + $0x908] sm:$0xff] }
  0xfe   :  { %903 = vmatprep.subr.mxu0 %v580_v1  ;;  %837 = vmatpush2.msra.mxu1 %v757_v10  ;;  %v673_v1 = vld [vmem:[#allocation10 + $0x900] sm:$0xff] }
  0xff   :  { %904 = vmatpush1.msra.mxu0 %v579_v3  ;;  %838 = vmatprep.subr.mxu1 %v752_v12  ;;  %v1574_v3 = vld [vmem:[#allocation8 + $0x1] sm:$0x1]  ;;  %v308_v10 = vld [vmem:[#allocation11] sm:$0x3f] }
 0x100   :  { %905 = vmatprep.subr.mxu0 %v766_v5  ;;  %839 = vmatpush2.msra.mxu1 %v751_v14  ;;  %v672_v5 = vld [vmem:[#allocation10 + $0x8f8] sm:$0xff] }
 0x101   :  { %906 = vmatpush2.msra.mxu0 %v765_v7  ;;  %840 = vmatprep.subr.mxu1 %v746_v49  ;;  %v1579_v7 = vshrl.u32 %v310_v6, 7 }
 0x102   :  { %907 = vmatprep.subr.mxu0 %v760_v9  ;;  %841 = vmatpush2.msra.mxu1 %v745_v16 }
 0x103   :  { %908 = vmatpush2.msra.mxu0 %v759_v11  ;;  %842 = vmatprep.subr.mxu1 %v740_v18  ;;  %v312_v8 = vsub.s32 0, %v1579_v7  ;;  %v316_v9 = vsub.s32 1, %v1579_v7  ;;  %v324_v18 = vsub.s32 3, %v1579_v7 }
 0x104   :  { %909 = vmatprep.subr.mxu0 %v754_v13  ;;  %843 = vmatpush2.msra.mxu1 %v739_v20 }
 0x105   :  { %910 = vmatpush2.msra.mxu0 %v753_v15  ;;  %844 = vmatprep.subr.mxu1 %v734_v22  ;;  %v313_v12 = vrot.slane %v308_v10, %v312_v8  ;;  %v317_v13 = vrot.slane %v308_v10, %v316_v9  ;;  %v325_v22 = vrot.slane %v308_v10, %v324_v18 }
 0x106   :  { %911 = vmatprep.subr.mxu0 %v748_v17  ;;  %845 = vmatpush2.msra.mxu1 %v733_v24  ;;  %v320_v17 = vsub.s32 2, %v1579_v7 }
 0x107   :  { %912 = vmatpush2.msra.mxu0 %v747_v19  ;;  %846 = vmatprep.subr.mxu1 %v728_v26 }
 0x108   :  { %913 = vmatprep.subr.mxu0 %v742_v21  ;;  %847 = vmatpush2.msra.mxu1 %v727_v28  ;;  %v321_v21 = vrot.slane %v308_v10, %v320_v17 }
 0x109   :  { %914 = vmatpush2.msra.mxu0 %v741_v23  ;;  %848 = vmatprep.subr.mxu1 %v722_v30  ;;  %v332_v30 = vsub.s32 5, %v1579_v7 }
 0x10a   :  { %915 = vmatprep.subr.mxu0 %v736_v25  ;;  %849 = vmatpush2.msra.mxu1 %v721_v32 }
 0x10b   :  { %916 = vmatpush2.msra.mxu0 %v735_v27  ;;  %850 = vmatprep.subr.mxu1 %v716_v34 }
 0x10c   :  { %917 = vmatprep.subr.mxu0 %v730_v29  ;;  %851 = vmatpush2.msra.mxu1 %v715_v35 }
 0x10d   :  { %918 = vmatpush2.msra.mxu0 %v729_v31  ;;  %852 = vmatprep.subr.mxu1 %v710_v37  ;;  %v328_v31 = vsub.s32 4, %v1579_v7  ;;  %v1127_v7 = vand.u32 127, %v310_v6 }
 0x10e   :  { %919 = vmatprep.subr.mxu0 %v724_v33  ;;  %853 = vmatpush2.msra.mxu1 %v709_v39  ;;  %v333_v33 = vrot.slane %v308_v10, %v332_v30 }
 0x10f   :  { %920 = vmatpush2.msra.mxu0 %v723_v54  ;;  %854 = vmatprep.subr.mxu1 %v704_v41  ;;  %v329_v35 = vrot.slane %v308_v10, %v328_v31  ;;  %v617_v10 = vld [vmem:[#allocation10 + $0x740] sm:$0xff] }
 0x110   :  { %921 = vmatprep.subr.mxu0 %v718_v36  ;;  %855 = vmatpush2.msra.mxu1 %v703_v43 }
 0x111   :  { %922 = vmatpush2.msra.mxu0 %v717_v38  ;;  %856 = vmatprep.subr.mxu1 %v698_v45 }
 0x112   :  { %923 = vmatprep.subr.mxu0 %v712_v40  ;;  %857 = vmatpush2.msra.mxu1 %v697_v47 }
 0x113   :  { %924 = vmatpush2.msra.mxu0 %v711_v42  ;;  %858 = vmatprep.subr.mxu1 %v692_v50  ;;  %v671_v50 = vld [vmem:[#allocation10 + $0x8f0] sm:$0xff] }
 0x114   :  { %925 = vmatprep.subr.mxu0 %v706_v44  ;;  %859 = vmatpush2.msra.mxu1 %v691_v52  ;;  %v665_v52 = vld [vmem:[#allocation10 + $0x8c0] sm:$0xff] }
 0x115   :  { %926 = vmatpush2.msra.mxu0 %v705_v46  ;;  %860 = vmatprep.subr.mxu1 %v686_v55  ;;  %v1282_v46 = vld [vmem:[#allocation8] sm:$0x1]  ;;  %v659_v55 = vld [vmem:[#allocation10 + $0x890] sm:$0xff] }
 0x116   :  { %927 = vmatprep.subr.mxu0 %v700_v48  ;;  %861 = vmatpush2.msra.mxu1 %v685_v57  ;;  %v653_v57 = vld [vmem:[#allocation10 + $0x860] sm:$0xff] }
 0x117   :  { %928 = vmatpush2.msra.mxu0 %v699_v51  ;;  %862 = vmatprep.subr.mxu1 %v680_v59  ;;  %v666_v51 = vld [vmem:[#allocation10 + $0x8c8] sm:$0xff]  ;;  %v647_v59 = vld [vmem:[#allocation10 + $0x830] sm:$0xff] }
 0x118   :  { %929 = vmatprep.subr.mxu0 %v694_v53  ;;  %863 = vmatpush2.msra.mxu1 %v679_v61  ;;  %v660_v53 = vld [vmem:[#allocation10 + $0x898] sm:$0xff]  ;;  %v641_v61 = vld [vmem:[#allocation10 + $0x800] sm:$0xff] }
 0x119   :  { %930 = vmatpush2.msra.mxu0 %v693_v56  ;;  %864 = vmatprep.subr.mxu1 %v674_v63  ;;  %v654_v56 = vld [vmem:[#allocation10 + $0x868] sm:$0xff]  ;;  %v635_v63 = vld [vmem:[#allocation10 + $0x7d0] sm:$0xff] }
 0x11a   :  { %931 = vmatprep.subr.mxu0 %v688_v58  ;;  %865 = vmatpush2.msra.mxu1 %v673_v1  ;;  %v648_v58 = vld [vmem:[#allocation10 + $0x838] sm:$0xff]  ;;  %v629_v1 = vld [vmem:[#allocation10 + $0x7a0] sm:$0xff] }
 0x11b   :  { %932 = vmatpush2.msra.mxu0 %v687_v60  ;;  %866 = vmatprep.mubr.f32.mxu1 %v1574_v3  ;;  %v642_v60 = vld [vmem:[#allocation10 + $0x808] sm:$0xff] }
 0x11c   :  { %933 = vmatprep.subr.mxu0 %v682_v62  ;;  %937 = vmatprep.mubr.f32.mxu0 %v1574_v3  ;;  %v636_v62 = vld [vmem:[#allocation10 + $0x7d8] sm:$0xff] }
 0x11d   :  { %934 = vmatpush2.msra.mxu0 %v681_v0  ;;  %944 = vmatprep.subr.mxu1 %v672_v5  ;;  %v630_v0 = vld [vmem:[#allocation10 + $0x7a8] sm:$0xff] }
 0x11e   :  { %935 = vmatprep.subr.mxu0 %v676_v2  ;;  %v624_v2 = vld [vmem:[#allocation10 + $0x778] sm:$0xff]  ;;  %v618_v5 = vld [vmem:[#allocation10 + $0x748] sm:$0xff] }
 0x11f   :  { %936 = vmatpush2.msra.mxu0 %v675_v4  ;;  %v623_v4 = vld [vmem:[#allocation10 + $0x770] sm:$0xff] }
 0x160   :  { %v406_v11 = vpop.f32.mrf.mxu0 }
 0x161   :  { %v407_v49 = vadd.f32 %v406_v11, %v313_v12  ;;  %v612_v11 = vld [vmem:[#allocation10 + $0x718] sm:$0xff]  ;;  %v611_v12 = vld [vmem:[#allocation10 + $0x710] sm:$0xff] }
 0x162   :  { %v408_v14 = vpop.f32.mrf.mxu0 }
 0x163   :  { %v409_v15 = vadd.f32 %v408_v14, %v317_v13  ;;  %v606_v13 = vld [vmem:[#allocation10 + $0x6e8] sm:$0xff]  ;;  %v605_v14 = vld [vmem:[#allocation10 + $0x6e0] sm:$0xff] }
 0x165   :  { %v553_v16 = vadd.f32 %v409_v15, %v407_v49  ;;  %v600_v49 = vld [vmem:[#allocation10 + $0x6b8] sm:$0xff]  ;;  %v599_v15 = vld [vmem:[#allocation10 + $0x6b0] sm:$0xff] }
 0x167   :  { %v1184_v20 = vmul.f32 -1.442695, %v553_v16  ;;  %v594_v16 = vld [vmem:[#allocation10 + $0x688] sm:$0xff] }
 0x169   :  { %v477_v19 = vpop.f32.mrf.mxu1  ;;  %1258 = vpow2.f32 %v1184_v20  ;;  %v588_v20 = vld [vmem:[#allocation10 + $0x658] sm:$0xff] }
 0x16a   :  { %v478_v24 = vadd.f32 %v477_v19, %v321_v21  ;;  %v593_v19 = vld [vmem:[#allocation10 + $0x680] sm:$0xff]  ;;  %v587_v21 = vld [vmem:[#allocation10 + $0x650] sm:$0xff] }
 0x16b   :  { %v479_v23 = vpop.f32.mrf.mxu1 }
 0x16c   :  { %v480_v25 = vadd.f32 %v479_v23, %v325_v22  ;;  %v582_v22 = vld [vmem:[#allocation10 + $0x628] sm:$0xff]  ;;  %v581_v23 = vld [vmem:[#allocation10 + $0x620] sm:$0xff] }
 0x16e   :  { %v560_v26 = vadd.f32 %v480_v25, %v478_v24  ;;  %v768_v24 = vld [vmem:[#allocation10 + $0xbf8] sm:$0xff]  ;;  %v767_v25 = vld [vmem:[#allocation10 + $0xbf0] sm:$0xff] }
 0x170   :  { %v1185_v27 = vmul.f32 -1.442695, %v560_v26  ;;  %v762_v26 = vld [vmem:[#allocation10 + $0xbc8] sm:$0xff] }
 0x172   :  { %1260 = vpow2.f32 %v1185_v27  ;;  %v761_v27 = vld [vmem:[#allocation10 + $0xbc0] sm:$0xff] }
 0x176   :  { %v1259_v28 = vpop.eup %1258 }
 0x177   :  { %v557_v29 = vadd.f32 1.0, %v1259_v28  ;;  %v756_v28 = vld [vmem:[#allocation10 + $0xb98] sm:$0xff] }
 0x179   :  { %1262 = vrcp.f32 %v557_v29  ;;  %v755_v29 = vld [vmem:[#allocation10 + $0xb90] sm:$0xff] }
 0x17f   :  { %v1261_v32 = vpop.eup %1260 }
 0x180   :  { %v564_v54 = vadd.f32 1.0, %v1261_v32  ;;  %v750_v32 = vld [vmem:[#allocation10 + $0xb68] sm:$0xff] }
 0x182   :  { %1264 = vrcp.f32 %v564_v54  ;;  %v743_v54 = vld [vmem:[#allocation10 + $0xb30] sm:$0xff] }
 0x186   :  { %v1263_v38 = vpop.eup %1262 }
 0x18f   :  { %v1265_v42 = vpop.eup %1264 }
 0x190   :  { %v570_v43 = vsub.f32 1.0, %v1265_v42  ;;  %v572_v47 = vmul.f32 %v1282_v46, %v1265_v42  ;;  %v719_v42 = vld [vmem:[#allocation10 + $0xa70] sm:$0xff] }
 0x191   :  { %v707_v46 = vld [vmem:[#allocation10 + $0xa10] sm:$0xff] }
 0x1a0   :  { %v548_v34 = vpop.f32.mrf.mxu0 }
 0x1a1   :  { %v549_v39 = vadd.f32 %v548_v34, %v329_v35  ;;  %v744_v34 = vld [vmem:[#allocation10 + $0xb38] sm:$0xff]  ;;  %v738_v35 = vld [vmem:[#allocation10 + $0xb08] sm:$0xff] }
 0x1a2   :  { %v550_v36 = vpop.f32.mrf.mxu0 }
 0x1a3   :  { %v551_v37 = vadd.f32 %v550_v36, %v333_v33  ;;  %v749_v33 = vld [vmem:[#allocation10 + $0xb60] sm:$0xff] }
 0x1a4   :  { %v737_v36 = vld [vmem:[#allocation10 + $0xb00] sm:$0xff] }
 0x1a5   :  { %v567_v40 = vmul.f32 %v1263_v38, %v551_v37  ;;  %v732_v37 = vld [vmem:[#allocation10 + $0xad8] sm:$0xff]  ;;  %v731_v38 = vld [vmem:[#allocation10 + $0xad0] sm:$0xff] }
 0x1a7   :  { %v568_v41 = vadd.f32 %v567_v40, %v549_v39  ;;  %v726_v39 = vld [vmem:[#allocation10 + $0xaa8] sm:$0xff]  ;;  %v725_v40 = vld [vmem:[#allocation10 + $0xaa0] sm:$0xff] }
 0x1a9   :  { %1266 = vtanh.f32 %v568_v41  ;;  %v720_v41 = vld [vmem:[#allocation10 + $0xa78] sm:$0xff] }
 0x1b6   :  { %v1267_v44 = vpop.eup %1266 }
 0x1b7   :  { %v571_v45 = vmul.f32 %v1267_v44, %v570_v43  ;;  %v714_v43 = vld [vmem:[#allocation10 + $0xa48] sm:$0xff]  ;;  %v713_v44 = vld [vmem:[#allocation10 + $0xa40] sm:$0xff] }
 0x1b9   :  { %v1599_v48 = vadd.f32 %v572_v47, %v571_v45  ;;  %v708_v45 = vld [vmem:[#allocation10 + $0xa18] sm:$0xff]  ;;  %v702_v47 = vld [vmem:[#allocation10 + $0x9e8] sm:$0xff] }
 0x1bb   :  { %867 = vmatmul.mubr.f32.vlgmr.msra.gmra.mxu1 %v1599_v48  ;;  %574 = vst [vmem:[#allocation17] sm:$0x1] %v1599_v48  ;;  %938 = vmatmul.mubr.f32.vlgmr.msra.gmra.mxu0 %v1599_v48 }
 0x1bc   :  { %945 = vmatpush1.msra.mxu1 %v671_v50  ;;  %1008 = vmatprep.mubr.f32.mxu1 %v1574_v3  ;;  %v701_v50 = vld [vmem:[#allocation10 + $0x9e0] sm:$0xff] }
 0x1bd   :  { %946 = vmatprep.subr.mxu1 %v666_v51  ;;  %v696_v51 = vld [vmem:[#allocation10 + $0x9b8] sm:$0xff] }
 0x1be   :  { %947 = vmatpush1.msra.mxu1 %v665_v52  ;;  %v695_v52 = vld [vmem:[#allocation10 + $0x9b0] sm:$0xff] }
 0x1bf   :  { %948 = vmatprep.subr.mxu1 %v660_v53  ;;  %v690_v53 = vld [vmem:[#allocation10 + $0x988] sm:$0xff] }
 0x1c0   :  { %949 = vmatpush1.msra.mxu1 %v659_v55  ;;  %v689_v55 = vld [vmem:[#allocation10 + $0x980] sm:$0xff] }
 0x1c1   :  { %950 = vmatprep.subr.mxu1 %v654_v56  ;;  %v684_v56 = vld [vmem:[#allocation10 + $0x958] sm:$0xff] }
 0x1c2   :  { %951 = vmatpush1.msra.mxu1 %v653_v57  ;;  %v683_v57 = vld [vmem:[#allocation10 + $0x950] sm:$0xff] }
 0x1c3   :  { %952 = vmatprep.subr.mxu1 %v648_v58  ;;  %v678_v58 = vld [vmem:[#allocation10 + $0x928] sm:$0xff] }
 0x1c4   :  { %953 = vmatpush1.msra.mxu1 %v647_v59  ;;  %v677_v59 = vld [vmem:[#allocation10 + $0x920] sm:$0xff] }
 0x1c5   :  { %954 = vmatprep.subr.mxu1 %v642_v60  ;;  %v1052_v60 = vld [vmem:[#allocation13 + $0x78] sm:$0xff] }
 0x1c6   :  { %955 = vmatpush1.msra.mxu1 %v641_v61  ;;  %v1480_v61 = vmov 0.0  }
 0x1c7   :  { %956 = vmatprep.subr.mxu1 %v636_v62  ;;  %1206 = vmatprep.subr.mxu0 %v1480_v61  ;;  %v1051_v62 = vld [vmem:[#allocation13 + $0x70] sm:$0xff] }
 0x1c8   :  { %957 = vmatpush1.msra.mxu1 %v635_v63  ;;  %1207 = vmatpush3.msra.mxu0 %v1052_v60  ;;  %v1050_v63 = vld [vmem:[#allocation13 + $0x68] sm:$0xff] }
 0x1c9   :  { %958 = vmatprep.subr.mxu1 %v630_v0  ;;  %1208 = vmatprep.subr.mxu0 %v1480_v61  ;;  %v1049_v0 = vld [vmem:[#allocation13 + $0x60] sm:$0xff] }
 0x1ca   :  { %959 = vmatpush1.msra.mxu1 %v629_v1  ;;  %1209 = vmatpush3.msra.mxu0 %v1051_v62  ;;  %v1048_v1 = vld [vmem:[#allocation13 + $0x58] sm:$0xff] }
 0x1cb   :  { %960 = vmatprep.subr.mxu1 %v624_v2  ;;  %1210 = vmatprep.subr.mxu0 %v1480_v61  ;;  %v1047_v2 = vld [vmem:[#allocation13 + $0x50] sm:$0xff] }
 0x1cc   :  { %961 = vmatpush1.msra.mxu1 %v623_v4  ;;  %1211 = vmatpush3.msra.mxu0 %v1050_v63  ;;  %v1045_v4 = vld [vmem:[#allocation13 + $0x40] sm:$0xff] }
 0x1cd   :  { %962 = vmatprep.subr.mxu1 %v618_v5  ;;  %1212 = vmatprep.subr.mxu0 %v1480_v61  ;;  %v1044_v5 = vld [vmem:[#allocation13 + $0x38] sm:$0xff] }
 0x1ce   :  { %963 = vmatpush1.msra.mxu1 %v617_v10  ;;  %1213 = vmatpush3.msra.mxu0 %v1049_v0  ;;  %v1043_v10 = vld [vmem:[#allocation13 + $0x30] sm:$0xff] }
 0x1cf   :  { %964 = vmatprep.subr.mxu1 %v612_v11  ;;  %1214 = vmatprep.subr.mxu0 %v1480_v61  ;;  %v1042_v11 = vld [vmem:[#allocation13 + $0x28] sm:$0xff] }
 0x1d0   :  { %965 = vmatpush1.msra.mxu1 %v611_v12  ;;  %1215 = vmatpush3.msra.mxu0 %v1048_v1  ;;  %v1041_v12 = vld [vmem:[#allocation13 + $0x20] sm:$0xff] }
 0x1d1   :  { %966 = vmatprep.subr.mxu1 %v606_v13  ;;  %1216 = vmatprep.subr.mxu0 %v1480_v61  ;;  %v1040_v13 = vld [vmem:[#allocation13 + $0x18] sm:$0xff] }
 0x1d2   :  { %967 = vmatpush1.msra.mxu1 %v605_v14  ;;  %1217 = vmatpush3.msra.mxu0 %v1047_v2  ;;  %v1039_v14 = vld [vmem:[#allocation13 + $0x10] sm:$0xff] }
 0x1d3   :  { %968 = vmatprep.subr.mxu1 %v600_v49  ;;  %1218 = vmatprep.subr.mxu0 %v1480_v61  ;;  %v1038_v49 = vld [vmem:[#allocation13 + $0x8] sm:$0xff] }
 0x1d4   :  { %969 = vmatpush1.msra.mxu1 %v599_v15  ;;  %1238 = vmatprep.mubr.msk.f32.mxu0 %vm1481_vm0, %v1480_v61  ;;  %v1037_v15 = vld [vmem:[#allocation13] sm:$0xff] }
 0x1d5   :  { %970 = vmatprep.subr.mxu1 %v594_v16 }
 0x1d6   :  { %971 = vmatpush1.msra.mxu1 %v593_v19  ;;  %v770_v19 = vld [vmem:[#allocation11 + $0x6] sm:$0x3f] }
 0x1d7   :  { %972 = vmatprep.subr.mxu1 %v588_v20  ;;  %v779_v20 = vrot.slane %v770_v19, %v316_v9 }
 0x1d8   :  { %973 = vmatpush1.msra.mxu1 %v587_v21 }
 0x1d9   :  { %974 = vmatprep.subr.mxu1 %v582_v22  ;;  %v775_v22 = vrot.slane %v770_v19, %v312_v8 }
 0x1da   :  { %975 = vmatpush1.msra.mxu1 %v581_v23 }
 0x1db   :  { %976 = vmatprep.subr.mxu1 %v768_v24 }
 0x1dc   :  { %977 = vmatpush2.msra.mxu1 %v767_v25 }
 0x1dd   :  { %978 = vmatprep.subr.mxu1 %v762_v26 }
 0x1de   :  { %979 = vmatpush2.msra.mxu1 %v761_v27 }
 0x1df   :  { %980 = vmatprep.subr.mxu1 %v756_v28  ;;  %v787_v28 = vrot.slane %v770_v19, %v324_v18  ;;  %v791_v18 = vrot.slane %v770_v19, %v328_v31  ;;  %v1128_v31 = vstv %s1124_s6 }
 0x1e0   :  { %981 = vmatpush2.msra.mxu1 %v755_v29  ;;  %vm1129_vm1 = vcmp.ge.s32.totalorder %v1127_v7, %v1128_v31 }
 0x1e1   :  { %982 = vmatprep.subr.mxu1 %v750_v32  ;;  %v783_v32 = vrot.slane %v770_v19, %v320_v17 }
 0x1e2   :  { %983 = vmatpush2.msra.mxu1 %v749_v33 }
 0x1e3   :  { %984 = vmatprep.subr.mxu1 %v744_v34 }
 0x1e4   :  { %985 = vmatpush2.msra.mxu1 %v743_v54 }
 0x1e5   :  { %986 = vmatprep.subr.mxu1 %v738_v35 }
 0x1e6   :  { %987 = vmatpush2.msra.mxu1 %v737_v36 }
 0x1e7   :  { %988 = vmatprep.subr.mxu1 %v732_v37  ;;  %v795_v37 = vrot.slane %v770_v19, %v332_v30 }
 0x1e8   :  { %989 = vmatpush2.msra.mxu1 %v731_v38 }
 0x1e9   :  { %990 = vmatprep.subr.mxu1 %v726_v39 }
 0x1ea   :  { %991 = vmatpush2.msra.mxu1 %v725_v40 }
 0x1eb   :  { %992 = vmatprep.subr.mxu1 %v720_v41 }
 0x1ec   :  { %993 = vmatpush2.msra.mxu1 %v719_v42 }
 0x1ed   :  { %994 = vmatprep.subr.mxu1 %v714_v43 }
 0x1ee   :  { %995 = vmatpush2.msra.mxu1 %v713_v44 }
 0x1ef   :  { %996 = vmatprep.subr.mxu1 %v708_v45 }
 0x1f0   :  { %997 = vmatpush2.msra.mxu1 %v707_v46 }
 0x1f1   :  { %998 = vmatprep.subr.mxu1 %v702_v47 }
 0x1f2   :  { %999 = vmatpush2.msra.mxu1 %v701_v50 }
 0x1f3   :  { %1000 = vmatprep.subr.mxu1 %v696_v51 }
 0x1f4   :  { %1001 = vmatpush2.msra.mxu1 %v695_v52  ;;  %v1131_v52 = vstv %s1130_s10 }
 0x1f5   :  { %1002 = vmatprep.subr.mxu1 %v690_v53  ;;  %vm1132_vm2 = vcmp.lt.s32.totalorder %v1127_v7, %v1131_v52  ;;  %v1053_v53 = vld [vmem:[#allocation14] sm:$0x1] }
 0x1f6   :  { %1003 = vmatpush2.msra.mxu1 %v689_v55  ;;  %vm1133_vm3 = vmand %vm1129_vm1, %vm1132_vm2 }
 0x1f7   :  { %1004 = vmatprep.subr.mxu1 %v684_v56 }
 0x1f8   :  { %1005 = vmatpush2.msra.mxu1 %v683_v57 }
 0x1f9   :  { %1006 = vmatprep.subr.mxu1 %v678_v58 }
 0x1fa   :  { %1007 = vmatpush2.msra.mxu1 %v677_v59 }
 0x1fb   :  { %1009 = vmatmul.mubr.f32.vlgmr.msra.gmra.mxu1 %v1599_v48  ;;  %v1046_v48 = vld [vmem:[#allocation13 + $0x48] sm:$0xff] }
 0x1fc   :  { %1219 = vmatpush3.msra.mxu0 %v1046_v48 }
 0x1fd   :  { %1220 = vmatprep.subr.mxu0 %v1480_v61 }
 0x1fe   :  { %1221 = vmatpush3.msra.mxu0 %v1045_v4 }
 0x1ff   :  { %1222 = vmatprep.subr.mxu0 %v1480_v61 }
 0x200   :  { %1223 = vmatpush3.msra.mxu0 %v1044_v5 }
 0x201   :  { %1224 = vmatprep.subr.mxu0 %v1480_v61 }
 0x202   :  { %1225 = vmatpush3.msra.mxu0 %v1043_v10 }
 0x203   :  { %1226 = vmatprep.subr.mxu0 %v1480_v61 }
 0x204   :  { %1227 = vmatpush3.msra.mxu0 %v1042_v11 }
 0x205   :  { %1228 = vmatprep.subr.mxu0 %v1480_v61 }
 0x206   :  { %1229 = vmatpush3.msra.mxu0 %v1041_v12 }
 0x207   :  { %1230 = vmatprep.subr.mxu0 %v1480_v61 }
 0x208   :  { %1231 = vmatpush3.msra.mxu0 %v1040_v13 }
 0x209   :  { %1232 = vmatprep.subr.mxu0 %v1480_v61 }
 0x20a   :  { %1233 = vmatpush3.msra.mxu0 %v1039_v14 }
 0x20b   :  { %1234 = vmatprep.subr.mxu0 %v1480_v61 }
 0x20c   :  { %1235 = vmatpush3.msra.mxu0 %v1038_v49 }
 0x20d   :  { %1236 = vmatprep.subr.mxu0 %v1480_v61 }
 0x20e   :  { %1237 = vmatpush3.msra.mxu0 %v1037_v15 }
 0x27b   :  { %v868_v16 = vpop.f32.mrf.mxu1  ;;  %v939_v26 = vpop.f32.mrf.mxu0 }
 0x27c   :  { %v869_v24 = vadd.f32 %v868_v16, %v775_v22  ;;  %v940_v34 = vadd.f32 %v939_v26, %v783_v32 }
 0x27d   :  { %v870_v21 = vpop.f32.mrf.mxu1  ;;  %v941_v29 = vpop.f32.mrf.mxu0 }
 0x27e   :  { %v871_v23 = vadd.f32 %v870_v21, %v779_v20  ;;  %v942_v33 = vadd.f32 %v941_v29, %v787_v28 }
 0x280   :  { %v1015_v25 = vadd.f32 %v871_v23, %v869_v24  ;;  %v1022_v9 = vadd.f32 %v942_v33, %v940_v34 }
 0x282   :  { %v1186_v27 = vmul.f32 -1.442695, %v1015_v25  ;;  %v1187_v54 = vmul.f32 -1.442695, %v1022_v9 }
 0x284   :  { %1268 = vpow2.f32 %v1186_v27 }
 0x285   :  { %1270 = vpow2.f32 %v1187_v54 }
 0x291   :  { %v1269_v35 = vpop.eup %1268 }
 0x292   :  { %v1019_v8 = vadd.f32 1.0, %v1269_v35  ;;  %v1271_v36 = vpop.eup %1270 }
 0x293   :  { %v1026_v39 = vadd.f32 1.0, %v1271_v36 }
 0x294   :  { %1272 = vrcp.f32 %v1019_v8 }
 0x295   :  { %1274 = vrcp.f32 %v1026_v39 }
 0x2a1   :  { %v1273_v41 = vpop.eup %1272 }
 0x2a2   :  { %v1275_v45 = vpop.eup %1274 }
 0x2a3   :  { %v1032_v46 = vsub.f32 1.0, %v1275_v45  ;;  %v1034_v51 = vmul.f32 %v1275_v45, %v1574_v3 }
 0x2bb   :  { %v1010_v38 = vpop.f32.mrf.mxu1 }
 0x2bc   :  { %v1011_v42 = vadd.f32 %v1010_v38, %v791_v18 }
 0x2bd   :  { %v1012_v40 = vpop.f32.mrf.mxu1 }
 0x2be   :  { %v1013_v17 = vadd.f32 %v1012_v40, %v795_v37 }
 0x2c0   :  { %v1029_v43 = vmul.f32 %v1273_v41, %v1013_v17 }
 0x2c2   :  { %v1030_v44 = vadd.f32 %v1029_v43, %v1011_v42 }
 0x2c4   :  { %1276 = vtanh.f32 %v1030_v44 }
 0x2d1   :  { %v1277_v47 = vpop.eup %1276 }
 0x2d2   :  { %v1033_v50 = vmul.f32 %v1277_v47, %v1032_v46 }
 0x2d4   :  { %v1035_v30 = vadd.f32 %v1034_v51, %v1033_v50 }
 0x2d6   :  { %1239 = vmatmul.mubr.f32.vlgmr.msra.gmra.mxu0 %v1035_v30  ;;  %1036 = vst [vmem:[#allocation17 + $0x1] sm:$0x1] %v1035_v30 }
 0x396   :  { %v1120_v55 = vpop.f32.mrf.mxu0 }
 0x397   :  { %v1121_v56 = vadd.f32 %v1120_v55, %v1053_v53 }
 0x398   :  { %v1240_v57 = vpop.f32.mrf.mxu0 }
 0x399   :  { %v1134_v58 = vsel %vm1133_vm3, %v1121_v56, -1e+30 }
 0x39a   :  { %v1136_v3 = vsel %vm1135_vm4, %v1134_v58, -inf }
 0x39b   :  { %1137 = vmax.xlane.f32.xlu0 %v1136_v3 }
 0x424   :  { %v1138_v59 = vpop.xlane.xlu0 %1137 }
 0x425   :  { %v1139_v60 = vsub.f32 %v1134_v58, %v1138_v59 }
 0x427   :  { %v1140_v61 = vmul.f32 1.442695, %v1139_v60 }
 0x429   :  { %1278 = vpow2.f32 %v1140_v61 }
 0x436   :  { %v1279_v62 = vpop.eup %1278 }
 0x437   :  { %v1142_v63 = vsel %vm1133_vm3, %v1279_v62, 0.0 }
 0x438   :  { %v1143_v6 = vsel %vm1135_vm4, %v1142_v63, 0.0 }
 0x439   :  { %1144 = vadd.xlane.f32.xlu0 %v1143_v6 }
 0x43a   :  { %1424 = shalt.err (!%p1421_p10)
}
 0x43b   :  { %1168 = dma.vmem_to_hbm [thread:$0]  %s1166_s12, 32, %s1635_s9, [#allocation18]  }
 0x43c   :  { %s1483_s5 = smov [#allocation16]  }
 0x43d   :  { %s1155_s15 = sshll.u32 %s1483_s5, 4  ;;  %s1156_s15 = int_to_ptr.vmem [resolvable:$true] %s1155_s15 }
 0x43e   :  { %s1433_s16 = scalar_lea.vmem %s1156_s15, 16  ;;  %s1437_s1 = scalar_lea.vmem %s1156_s15, 32 }
 0x43f   :  { %p1434_p12 = scmp.ne.s32.totalorder %s1156_s15, %s1433_s16  ;;  %p1438_p13 = scmp.lt.s32.totalorder %s1156_s15, %s1156_s15 }
 0x440   :  { %p1439_p0 = scmp.lt.s32.totalorder %s1437_s1, %s1433_s16 }
 0x442   :  { %p1440_p1 = por %p1439_p0, %p1438_p13 }
 0x444   :  { %p1441_p2 = pnand %p1440_p1, %p1434_p12 }
 0x4c2   :  { %v1145_v0 = vpop.xlane.xlu0 %1144 }
 0x4c3   :  { %1280 = vrcp.f32 %v1145_v0 }
 0x4d0   :  { %v1281_v1 = vpop.eup %1280 }
 0x4d1   :  { %v1147_v2 = vmul.f32 %v1281_v1, %v1142_v63 }
 0x4d3   :  { %1148 = vst [vmem:[#allocation16] sm:$0x1] %v1147_v2 }
 0x4d4   :  { %1444 = shalt.err (!%p1441_p2)
}
 0x4d5   :  { %1158 = dma.vmem_to_hbm [thread:$0]  %s1156_s15, 16, %s1634_s8, [#allocation7]  }
 0x4d6   :  { %1463 = dma.done.wait [#allocation7], 16  }
 0x4d7   :  { %1464 = vsyncadd [#allocation7], 4294967280 }
 0x4d8   :  { %1465 = dma.done.wait [#allocation18], 32  }
 0x4d9   :  { %1466 = vsyncadd [#allocation18], 4294967264 }
 0x4da   :  { %1175 = vsyncpa [#allocation6], 1 }
 0x4db   :  { %1176 = vsyncpa [#allocation9], 1 }
 0x4dc   :  { %1177 = vsyncpa [#allocation12], 1 }
 0x4dd   :  { %1178 = vsyncpa [#allocation15], 1 }
 0x4de   :  { %1179 = vsyncpa [#allocation7], 1 }
 0x4df   :  { %1180 = vsyncpa [#allocation18], 1 }

</bundles_post_ra>
